<compile_context>
chip_gen: v6e
topology: v6e:2x2x1
jax: 0.10.0
libtpu: 0.0.40
codegen_flags: <defaults>
</compile_context>

<pallas_src>
import jax
import jax.numpy as jnp
from jax import lax
from jax.experimental import pallas as pl
from jax.experimental.pallas import tpu as pltpu

KH, KW = 5, 7     # kernel_size=[5, 7]
PH, PW = 2, 3     # padding=[2, 3]


# ---------------------------------------------------------------------------
# Fused kernel: conv1(5x7)+BN1+PReLU1 -> conv2(5x7)+BN2 -> (+shortcut) -> PReLU2
# One grid step = NB batch elements, stacked along the matmul M axis inside a
# single halo'd VMEM scratch (element stride S, a multiple of 8 sublanes).
# Each conv is KH matmuls of (R, W*Ci) x (W*Ci, W*Co); the dw taps and the W
# zero-padding are baked into the banded weights, so the only in-kernel
# slicing is on the (cheap) sublane axis of the scratch refs.
# ---------------------------------------------------------------------------
def _make_residual_kernel(H, NB, S, use_proj):
    R = (NB - 1) * S + H          # stacked matmul M (valid rows + inter-element junk rows)

    def kernel(*refs):
        if use_proj:
            (x_ref, w1_ref, w2_ref, b1_ref, b2_ref, w3_ref,
             alpha_ref, o_ref, xh_ref, y1h_ref) = refs
        else:
            (x_ref, w1_ref, w2_ref, b1_ref, b2_ref,
             alpha_ref, o_ref, xh_ref, y1h_ref) = refs
            w3_ref = None

        f32 = jnp.float32
        WCin = x_ref.shape[2]         # W * Cin
        WCout = o_ref.shape[2]        # W * Cout
        cdt = w1_ref.dtype            # MXU compute dtype (bf16 or f32)

        # ---- refresh the stacked, H-halo'd copy of x in VMEM ----
        # Only the halo / separator rows are zeroed (never the full buffer), and they
        # are re-zeroed every step so the kernel is correct under any per-core split
        # of the parallel grid (scratch is per TensorCore).
        zx = jnp.zeros((PH, WCin), f32)
        zxg = jnp.zeros((S - PH - H, WCin), f32)
        zy = jnp.zeros((PH, WCout), f32)
        zyg = jnp.zeros((S - PH - H, WCout), f32)
        for b in range(NB):
            lo = b * S
            xh_ref[lo:lo + PH, :] = zx                        # top zero-pad
            xh_ref[lo + PH + H:lo + S, :] = zxg               # bottom zero-pad + separator
            xh_ref[lo + PH:lo + PH + H, :] = x_ref[b, :, :]   # data rows
            y1h_ref[lo:lo + PH, :] = zy
            y1h_ref[lo + PH + H:lo + S, :] = zyg

        # ---- stage 1: conv1 (KH matmuls; BN1 scale pre-folded) + bias + PReLU ----
        # TODO(synk): for the scaled variant hoist a single compute-dtype copy of the
        #             halo instead of casting each overlapping tap slice (5x VPU casts).
        acc = jnp.zeros((R, WCout), f32)
        for dh in range(KH):
            acc = acc + jnp.dot(xh_ref[dh:dh + R, :].astype(cdt), w1_ref[dh],
                                preferred_element_type=f32)
        y1 = acc + b1_ref[...]                                # folded BN1 bias
        y1 = jnp.where(y1 >= 0, y1, alpha_ref[0] * y1)        # PReLU (Dropout = id in eval)

        # ---- y1 never leaves the chip: scatter valid rows into the halo'd scratch ----
        for b in range(NB):
            y1h_ref[b * S + PH:b * S + PH + H, :] = y1[b * S:b * S + H]

        # ---- stage 2: conv2 (BN2 scale pre-folded) + bias ----
        acc2 = jnp.zeros((R, WCout), f32)
        for dh in range(KH):
            acc2 = acc2 + jnp.dot(y1h_ref[dh:dh + R, :].astype(cdt), w2_ref[dh],
                                  preferred_element_type=f32)
        out = acc2 + b2_ref[...]                              # folded BN2 bias

        # ---- shortcut + final PReLU + per-element writeback ----
        if use_proj:
            # input row of x for stacked output row r sits at halo row r + PH
            out = out + jnp.dot(xh_ref[PH:PH + R, :].astype(cdt), w3_ref[...],
                                preferred_element_type=f32)
            out = jnp.where(out >= 0, out, alpha_ref[1] * out)
            for b in range(NB):
                o_ref[b, :, :] = out[b * S:b * S + H].astype(o_ref.dtype)
        else:
            for b in range(NB):
                y_b = out[b * S:b * S + H] + x_ref[b, :, :]   # identity shortcut, f32 exact
                y_b = jnp.where(y_b >= 0, y_b, alpha_ref[1] * y_b)
                o_ref[b, :, :] = y_b.astype(o_ref.dtype)

    return kernel


# ---------------------------------------------------------------------------
# Wrapper: BN folding (scale -> weights, bias -> kernel), banded-weight
# construction, batch stacking geometry, BlockSpecs and the single pallas_call.
# ---------------------------------------------------------------------------
def residual_forward(x_nhwc, params, *, use_1x1conv=False,
                     compute_dtype=jnp.bfloat16, out_dtype=jnp.float32,
                     batch_block=None):
    f32 = jnp.float32
    N, H, W, Cin = x_nhwc.shape
    Cout = params["w1"].shape[-1]
    x_nhwc = x_nhwc.astype(f32)

    # ---- batch-stacking geometry: element stride S is a multiple of 8 sublanes ----
    S = ((H + 2 * PH + 7) // 8) * 8
    if batch_block is None:
        want = pl.cdiv(128, S)                    # aim for >=~128 matmul rows per MXU push
        cap = max(1, (256 - H) // S + 1)          # keep the f32 (rows, W*Cout) acc << vreg file
        batch_block = max(1, min(N, want, cap))
    NB = max(1, min(batch_block, N))
    NT = pl.cdiv(N, NB)                           # grid steps
    N_pad = NT * NB
    if N_pad != N:
        x_nhwc = jnp.concatenate(
            [x_nhwc, jnp.zeros((N_pad - N, H, W, Cin), f32)], axis=0)

    # ---- fold eval-mode BatchNorm: scale into the conv weights, bias stays in-kernel ----
    def bn_fold(gamma, beta, mean, var, eps=1e-5):
        s = gamma.astype(f32) / jnp.sqrt(var.astype(f32) + eps)
        return s, beta.astype(f32) - mean.astype(f32) * s

    s1, b1 = bn_fold(*params["bn1"])
    s2, b2 = bn_fold(*params["bn2"])
    b1t = jnp.tile(b1, W).reshape(1, W * Cout)
    b2t = jnp.tile(b2, W).reshape(1, W * Cout)

    # ---- banded weights: dw taps + W zero-padding folded into (KH, W*Ci, W*Co) ----
    def banded_dw(w):
        _, KW_, Ci, Co = w.shape
        wi = jnp.arange(W)[:, None]                 # input freq position
        wo = jnp.arange(W)[None, :]                 # output freq position
        dw = wi - wo + PW                           # tap index, (W, W)
        valid = (dw >= 0) & (dw < KW_)              # implicit W zero-padding
        taps = w.astype(f32)[:, jnp.clip(dw, 0, KW_ - 1)]     # (KH, W, W, Ci, Co)
        taps = jnp.where(valid[None, :, :, None, None], taps, 0.0)
        # -> (KH, wi, ci, wo, co) -> (KH, W*Ci, W*Co)
        return taps.transpose(0, 1, 3, 2, 4).reshape(KH, W * Ci, W * Co)

    w1b = banded_dw(params["w1"].astype(f32) * s1[None, None, None, :]).astype(compute_dtype)
    w2b = banded_dw(params["w2"].astype(f32) * s2[None, None, None, :]).astype(compute_dtype)

    # PReLU slopes as scalars -> SMEM
    alphas = jnp.stack([jnp.asarray(params["alpha1"], f32).reshape(()),
                        jnp.asarray(params["alpha2"], f32).reshape(())])

    x2d = x_nhwc.reshape(N_pad, H, W * Cin)         # lane-dense, unpadded input

    inputs = [x2d, w1b, w2b, b1t, b2t]
    # NOTE: the constant operands below use constant index_maps, so Pallas does not
    # re-DMA them across grid steps; no single-buffering hint is required.
    in_specs = [
        pl.BlockSpec((NB, H, W * Cin), lambda n: (n, 0, 0)),             # x batch tile
        pl.BlockSpec((KH, W * Cin, W * Cout), lambda n: (0, 0, 0)),      # conv1 band (*BN1 scale)
        pl.BlockSpec((KH, W * Cout, W * Cout), lambda n: (0, 0, 0)),     # conv2 band (*BN2 scale)
        pl.BlockSpec((1, W * Cout), lambda n: (0, 0)),                   # BN1 bias
        pl.BlockSpec((1, W * Cout), lambda n: (0, 0)),                   # BN2 bias
    ]
    if use_1x1conv:
        w3b = (jnp.einsum("xy,io->xiyo", jnp.eye(W, dtype=f32),
                          params["w3"].astype(f32))
               .reshape(W * Cin, W * Cout).astype(compute_dtype))
        inputs.append(w3b)
        in_specs.append(pl.BlockSpec((W * Cin, W * Cout), lambda n: (0, 0)))  # 1x1 band
    else:
        assert Cin == Cout, "identity shortcut requires input_channels == num_channels"
    inputs.append(alphas)
    in_specs.append(pl.BlockSpec(memory_space=pltpu.SMEM))               # PReLU slopes

    kernel = _make_residual_kernel(H=H, NB=NB, S=S, use_proj=use_1x1conv)

    out2d = pl.pallas_call(
        kernel,
        out_shape=jax.ShapeDtypeStruct((N_pad, H, W * Cout), out_dtype),
        grid=(NT,),
        in_specs=in_specs,
        out_specs=pl.BlockSpec((NB, H, W * Cout), lambda n: (n, 0, 0)),
        scratch_shapes=[pltpu.VMEM((NB * S, W * Cin), jnp.float32),      # stacked halo'd x
                        pltpu.VMEM((NB * S, W * Cout), jnp.float32)],    # stacked halo'd y1
        compiler_params=pltpu.CompilerParams(
            dimension_semantics=("parallel",),
            # TODO(synk): re-derive NB / tile sizes against the 64 MiB VMEM budget on v7x
            #             when moving to production shapes.
            vmem_limit_bytes=32 * 1024 * 1024),
    )(*inputs)

    return out2d[:N].reshape(N, H, W, Cout)


# ---------------------------------------------------------------------------
# Pure-JAX reference (correctness check only)
# ---------------------------------------------------------------------------
def residual_reference(x, params, *, use_1x1conv=False):
    def conv(inp, w):
        return lax.conv_general_dilated(
            inp, w, window_strides=(1, 1), padding=[(PH, PH), (PW, PW)],
            dimension_numbers=("NHWC", "HWIO", "NHWC"))

    def bn(v, g, b, m, var, eps=1e-5):
        return (v - m) / jnp.sqrt(var + eps) * g + b

    def prelu(v, a):
        return jnp.where(v >= 0, v, a * v)

    g1, b1, m1, v1 = params["bn1"]
    g2, b2, m2, v2 = params["bn2"]
    y = prelu(bn(conv(x, params["w1"]), g1, b1, m1, v1), params["alpha1"])
    y = bn(conv(y, params["w2"]), g2, b2, m2, v2)
    if use_1x1conv:
        sc = jnp.einsum("nhwc,cd->nhwd", x, params["w3"])
    else:
        sc = x
    return prelu(y + sc, params["alpha2"])


if __name__ == "__main__":
    # PyTorch module input [M, C, T, F'] = [2, 4, 16, 16]  ->  NHWC [2, 16, 16, 4]
    M, Cin, T, Fp = 2, 4, 16, 16
    Cout = 8

    key = jax.random.PRNGKey(0)
    ks = jax.random.split(key, 20)

    x = jax.random.normal(ks[0], (M, T, Fp, Cin), jnp.float32)
    params = {
        "w1": 0.1 * jax.random.normal(ks[1], (KH, KW, Cin, Cout), jnp.float32),
        "w2": 0.1 * jax.random.normal(ks[2], (KH, KW, Cout, Cout), jnp.float32),
        "w3": 0.1 * jax.random.normal(ks[3], (Cin, Cout), jnp.float32),
        "bn1": (1.0 + 0.1 * jax.random.normal(ks[4], (Cout,), jnp.float32),
                0.1 * jax.random.normal(ks[5], (Cout,), jnp.float32),
                0.1 * jax.random.normal(ks[6], (Cout,), jnp.float32),
                1.0 + 0.1 * jnp.abs(jax.random.normal(ks[7], (Cout,), jnp.float32))),
        "bn2": (1.0 + 0.1 * jax.random.normal(ks[8], (Cout,), jnp.float32),
                0.1 * jax.random.normal(ks[9], (Cout,), jnp.float32),
                0.1 * jax.random.normal(ks[10], (Cout,), jnp.float32),
                1.0 + 0.1 * jnp.abs(jax.random.normal(ks[11], (Cout,), jnp.float32))),
        "alpha1": jnp.array(0.25, jnp.float32),   # nn.PReLU() default
        "alpha2": jnp.array(0.25, jnp.float32),
    }

    ref = residual_reference(x, params, use_1x1conv=True)

    # (a) default path: bf16 MXU operands (v6e/v7x fast path), f32 epilogue
    out = jax.block_until_ready(residual_forward(x, params, use_1x1conv=True))
    assert out.shape == (M, T, Fp, Cout), out.shape
    err = float(jnp.max(jnp.abs(out - ref)))
    scale = float(jnp.max(jnp.abs(ref)))
    assert err <= 5e-2 * max(scale, 1.0), f"bf16 path error too large: {err} (scale {scale})"

    # (b) f32 MXU path: tight check against the pure-JAX reference
    out32 = jax.block_until_ready(
        residual_forward(x, params, use_1x1conv=True, compute_dtype=jnp.float32))
    err32 = float(jnp.max(jnp.abs(out32 - ref)))
    assert err32 < 1e-3, f"f32 path error too large: {err32}"

    # (c) identity-shortcut variant (input_channels == num_channels, no 1x1 conv)
    C = 8
    x_id = jax.random.normal(ks[12], (M, T, Fp, C), jnp.float32)
    params_id = {
        "w1": 0.1 * jax.random.normal(ks[13], (KH, KW, C, C), jnp.float32),
        "w2": 0.1 * jax.random.normal(ks[14], (KH, KW, C, C), jnp.float32),
        "bn1": (1.0 + 0.1 * jax.random.normal(ks[15], (C,), jnp.float32),
                0.1 * jax.random.normal(ks[16], (C,), jnp.float32),
                0.1 * jax.random.normal(ks[17], (C,), jnp.float32),
                1.0 + 0.1 * jnp.abs(jax.random.normal(ks[18], (C,), jnp.float32))),
        "bn2": (1.0 + 0.1 * jax.random.normal(ks[19], (C,), jnp.float32),
                0.1 * jax.random.normal(ks[15], (C,), jnp.float32),
                0.1 * jax.random.normal(ks[16], (C,), jnp.float32),
                1.0 + 0.1 * jnp.abs(jax.random.normal(ks[17], (C,), jnp.float32))),
        "alpha1": jnp.array(0.25, jnp.float32),
        "alpha2": jnp.array(0.25, jnp.float32),
    }
    out_id = jax.block_until_ready(
        residual_forward(x_id, params_id, use_1x1conv=False, compute_dtype=jnp.float32))
    ref_id = residual_reference(x_id, params_id, use_1x1conv=False)
    err_id = float(jnp.max(jnp.abs(out_id - ref_id)))
    assert err_id < 1e-3, f"identity-shortcut path error too large: {err_id}"

    # (d) batch-padding path: N not divisible by the per-step batch tile
    x3 = jax.random.normal(ks[18], (3, T, Fp, Cin), jnp.float32)
    out3 = jax.block_until_ready(
        residual_forward(x3, params, use_1x1conv=True, compute_dtype=jnp.float32,
                         batch_block=2))
    ref3 = residual_reference(x3, params, use_1x1conv=True)
    err3 = float(jnp.max(jnp.abs(out3 - ref3)))
    assert err3 < 1e-3, f"padded-batch path error too large: {err3}"

    print("KERNEL_OK")
</pallas_src>

<mosaic_0001>
module attributes {stable_mosaic.version = 11 : i64} {
  func.func @kernel(%arg0: i32, %arg1: memref<2x16x64xf32, #tpu.memory_space<vmem>>, %arg2: memref<5x64x128xbf16, #tpu.memory_space<vmem>>, %arg3: memref<5x128x128xbf16, #tpu.memory_space<vmem>>, %arg4: memref<1x128xf32, #tpu.memory_space<vmem>>, %arg5: memref<1x128xf32, #tpu.memory_space<vmem>>, %arg6: memref<64x128xbf16, #tpu.memory_space<vmem>>, %arg7: memref<2xf32, #tpu.memory_space<smem>>, %arg8: memref<2x16x128xf32, #tpu.memory_space<vmem>>, %arg9: memref<48x64xf32, #tpu.memory_space<vmem>>, %arg10: memref<48x128xf32, #tpu.memory_space<vmem>>) attributes {dimension_semantics = [#tpu.dimension_semantics<parallel>], iteration_bounds = array<i64: 1>, scalar_prefetch = 0 : i64, scratch_operands = 2 : i64, tpu.core_type = #tpu.core_type<tc>, window_params = [{transform_indices = @transform_0, window_bounds = array<i64: 2, 16, 64>}, {pipeline_mode = #tpu.pipeline_mode<synchronous>, transform_indices = @transform_1, window_bounds = array<i64: 5, 64, 128>}, {pipeline_mode = #tpu.pipeline_mode<synchronous>, transform_indices = @transform_2, window_bounds = array<i64: 5, 128, 128>}, {pipeline_mode = #tpu.pipeline_mode<synchronous>, transform_indices = @transform_3, window_bounds = array<i64: 1, 128>}, {pipeline_mode = #tpu.pipeline_mode<synchronous>, transform_indices = @transform_4, window_bounds = array<i64: 1, 128>}, {pipeline_mode = #tpu.pipeline_mode<synchronous>, transform_indices = @transform_5, window_bounds = array<i64: 64, 128>}, {transform_indices = @transform_6, window_bounds = array<i64: 2>}, {transform_indices = @transform_7, window_bounds = array<i64: 2, 16, 128>}]} {
    %cst = arith.constant 0.000000e+00 : f32
    %0 = vector.broadcast %cst : f32 to vector<2x64xf32>
    %cst_0 = arith.constant 0.000000e+00 : f32
    %1 = vector.broadcast %cst_0 : f32 to vector<6x64xf32>
    %cst_1 = arith.constant 0.000000e+00 : f32
    %2 = vector.broadcast %cst_1 : f32 to vector<2x128xf32>
    %cst_2 = arith.constant 0.000000e+00 : f32
    %3 = vector.broadcast %cst_2 : f32 to vector<6x128xf32>
    %c0 = arith.constant 0 : index
    %c0_3 = arith.constant 0 : index
    %4 = vector.load %arg9[%c0, %c0_3] : memref<48x64xf32, #tpu.memory_space<vmem>>, vector<2x64xf32>
    tpu.vector_store %arg9[%c0, %c0_3], %0 {strides = array<i32>} : memref<48x64xf32, #tpu.memory_space<vmem>>, vector<2x64xf32>,
    %c18 = arith.constant 18 : index
    %c0_4 = arith.constant 0 : index
    %5 = vector.load %arg9[%c18, %c0_4] : memref<48x64xf32, #tpu.memory_space<vmem>>, vector<6x64xf32>
    tpu.vector_store %arg9[%c18, %c0_4], %1 {strides = array<i32>} : memref<48x64xf32, #tpu.memory_space<vmem>>, vector<6x64xf32>,
    %c0_5 = arith.constant 0 : index
    %c0_6 = arith.constant 0 : index
    %c0_7 = arith.constant 0 : index
    %6 = vector.load %arg1[%c0_5, %c0_6, %c0_7] : memref<2x16x64xf32, #tpu.memory_space<vmem>>, vector<1x16x64xf32>
    %7 = vector.shape_cast %6 : vector<1x16x64xf32> to vector<16x64xf32>
    %c2 = arith.constant 2 : index
    %c0_8 = arith.constant 0 : index
    %8 = vector.load %arg9[%c2, %c0_8] : memref<48x64xf32, #tpu.memory_space<vmem>>, vector<16x64xf32>
    tpu.vector_store %arg9[%c2, %c0_8], %7 {strides = array<i32>} : memref<48x64xf32, #tpu.memory_space<vmem>>, vector<16x64xf32>,
    %c0_9 = arith.constant 0 : index
    %c0_10 = arith.constant 0 : index
    %9 = vector.load %arg10[%c0_9, %c0_10] : memref<48x128xf32, #tpu.memory_space<vmem>>, vector<2x128xf32>
    tpu.vector_store %arg10[%c0_9, %c0_10], %2 {strides = array<i32>} : memref<48x128xf32, #tpu.memory_space<vmem>>, vector<2x128xf32>,
    %c18_11 = arith.constant 18 : index
    %c0_12 = arith.constant 0 : index
    %10 = vector.load %arg10[%c18_11, %c0_12] : memref<48x128xf32, #tpu.memory_space<vmem>>, vector<6x128xf32>
    tpu.vector_store %arg10[%c18_11, %c0_12], %3 {strides = array<i32>} : memref<48x128xf32, #tpu.memory_space<vmem>>, vector<6x128xf32>,
    %c24 = arith.constant 24 : index
    %c0_13 = arith.constant 0 : index
    %11 = vector.load %arg9[%c24, %c0_13] : memref<48x64xf32, #tpu.memory_space<vmem>>, vector<2x64xf32>
    tpu.vector_store %arg9[%c24, %c0_13], %0 {strides = array<i32>} : memref<48x64xf32, #tpu.memory_space<vmem>>, vector<2x64xf32>,
    %c42 = arith.constant 42 : index
    %c0_14 = arith.constant 0 : index
    %12 = vector.load %arg9[%c42, %c0_14] : memref<48x64xf32, #tpu.memory_space<vmem>>, vector<6x64xf32>
    tpu.vector_store %arg9[%c42, %c0_14], %1 {strides = array<i32>} : memref<48x64xf32, #tpu.memory_space<vmem>>, vector<6x64xf32>,
    %c1 = arith.constant 1 : index
    %c0_15 = arith.constant 0 : index
    %c0_16 = arith.constant 0 : index
    %13 = vector.load %arg1[%c1, %c0_15, %c0_16] : memref<2x16x64xf32, #tpu.memory_space<vmem>>, vector<1x16x64xf32>
    %14 = vector.shape_cast %13 : vector<1x16x64xf32> to vector<16x64xf32>
    %c26 = arith.constant 26 : index
    %c0_17 = arith.constant 0 : index
    %15 = vector.load %arg9[%c26, %c0_17] : memref<48x64xf32, #tpu.memory_space<vmem>>, vector<16x64xf32>
    tpu.vector_store %arg9[%c26, %c0_17], %14 {strides = array<i32>} : memref<48x64xf32, #tpu.memory_space<vmem>>, vector<16x64xf32>,
    %c24_18 = arith.constant 24 : index
    %c0_19 = arith.constant 0 : index
    %16 = vector.load %arg10[%c24_18, %c0_19] : memref<48x128xf32, #tpu.memory_space<vmem>>, vector<2x128xf32>
    tpu.vector_store %arg10[%c24_18, %c0_19], %2 {strides = array<i32>} : memref<48x128xf32, #tpu.memory_space<vmem>>, vector<2x128xf32>,
    %c42_20 = arith.constant 42 : index
    %c0_21 = arith.constant 0 : index
    %17 = vector.load %arg10[%c42_20, %c0_21] : memref<48x128xf32, #tpu.memory_space<vmem>>, vector<6x128xf32>
    tpu.vector_store %arg10[%c42_20, %c0_21], %3 {strides = array<i32>} : memref<48x128xf32, #tpu.memory_space<vmem>>, vector<6x128xf32>,
    %cst_22 = arith.constant 0.000000e+00 : f32
    %18 = vector.broadcast %cst_22 : f32 to vector<40x128xf32>
    %c0_23 = arith.constant 0 : index
    %c0_24 = arith.constant 0 : index
    %19 = vector.load %arg9[%c0_23, %c0_24] : memref<48x64xf32, #tpu.memory_space<vmem>>, vector<40x64xf32>
    %20 = arith.truncf %19 : vector<40x64xf32> to vector<40x64xbf16>
    %c0_25 = arith.constant 0 : index
    %c0_26 = arith.constant 0 : index
    %c0_27 = arith.constant 0 : index
    %21 = vector.load %arg2[%c0_25, %c0_26, %c0_27] : memref<5x64x128xbf16, #tpu.memory_space<vmem>>, vector<1x64x128xbf16>
    %22 = vector.shape_cast %21 : vector<1x64x128xbf16> to vector<64x128xbf16>
    %cst_28 = arith.constant dense<0.000000e+00> : vector<40x128xf32>
    %23 = tpu.matmul %20, %22, %cst_28 {dimension_numbers = #tpu.dot_dimension_numbers<[1], [0], [0], [1], [0, 0, 1, 1], [], []>} : vector<40x64xbf16>, vector<64x128xbf16>, vector<40x128xf32> -> vector<40x128xf32>
    %24 = arith.addf %18, %23 : vector<40x128xf32>
    %c1_29 = arith.constant 1 : index
    %c0_30 = arith.constant 0 : index
    %25 = vector.load %arg9[%c1_29, %c0_30] : memref<48x64xf32, #tpu.memory_space<vmem>>, vector<40x64xf32>
    %26 = arith.truncf %25 : vector<40x64xf32> to vector<40x64xbf16>
    %c1_31 = arith.constant 1 : index
    %c0_32 = arith.constant 0 : index
    %c0_33 = arith.constant 0 : index
    %27 = vector.load %arg2[%c1_31, %c0_32, %c0_33] : memref<5x64x128xbf16, #tpu.memory_space<vmem>>, vector<1x64x128xbf16>
    %28 = vector.shape_cast %27 : vector<1x64x128xbf16> to vector<64x128xbf16>
    %cst_34 = arith.constant dense<0.000000e+00> : vector<40x128xf32>
    %29 = tpu.matmul %26, %28, %cst_34 {dimension_numbers = #tpu.dot_dimension_numbers<[1], [0], [0], [1], [0, 0, 1, 1], [], []>} : vector<40x64xbf16>, vector<64x128xbf16>, vector<40x128xf32> -> vector<40x128xf32>
    %30 = arith.addf %24, %29 : vector<40x128xf32>
    %c2_35 = arith.constant 2 : index
    %c0_36 = arith.constant 0 : index
    %31 = vector.load %arg9[%c2_35, %c0_36] : memref<48x64xf32, #tpu.memory_space<vmem>>, vector<40x64xf32>
    %32 = arith.truncf %31 : vector<40x64xf32> to vector<40x64xbf16>
    %c2_37 = arith.constant 2 : index
    %c0_38 = arith.constant 0 : index
    %c0_39 = arith.constant 0 : index
    %33 = vector.load %arg2[%c2_37, %c0_38, %c0_39] : memref<5x64x128xbf16, #tpu.memory_space<vmem>>, vector<1x64x128xbf16>
    %34 = vector.shape_cast %33 : vector<1x64x128xbf16> to vector<64x128xbf16>
    %cst_40 = arith.constant dense<0.000000e+00> : vector<40x128xf32>
    %35 = tpu.matmul %32, %34, %cst_40 {dimension_numbers = #tpu.dot_dimension_numbers<[1], [0], [0], [1], [0, 0, 1, 1], [], []>} : vector<40x64xbf16>, vector<64x128xbf16>, vector<40x128xf32> -> vector<40x128xf32>
    %36 = arith.addf %30, %35 : vector<40x128xf32>
    %c3 = arith.constant 3 : index
    %c0_41 = arith.constant 0 : index
    %37 = vector.load %arg9[%c3, %c0_41] : memref<48x64xf32, #tpu.memory_space<vmem>>, vector<40x64xf32>
    %38 = arith.truncf %37 : vector<40x64xf32> to vector<40x64xbf16>
    %c3_42 = arith.constant 3 : index
    %c0_43 = arith.constant 0 : index
    %c0_44 = arith.constant 0 : index
    %39 = vector.load %arg2[%c3_42, %c0_43, %c0_44] : memref<5x64x128xbf16, #tpu.memory_space<vmem>>, vector<1x64x128xbf16>
    %40 = vector.shape_cast %39 : vector<1x64x128xbf16> to vector<64x128xbf16>
    %cst_45 = arith.constant dense<0.000000e+00> : vector<40x128xf32>
    %41 = tpu.matmul %38, %40, %cst_45 {dimension_numbers = #tpu.dot_dimension_numbers<[1], [0], [0], [1], [0, 0, 1, 1], [], []>} : vector<40x64xbf16>, vector<64x128xbf16>, vector<40x128xf32> -> vector<40x128xf32>
    %42 = arith.addf %36, %41 : vector<40x128xf32>
    %c4 = arith.constant 4 : index
    %c0_46 = arith.constant 0 : index
    %43 = vector.load %arg9[%c4, %c0_46] : memref<48x64xf32, #tpu.memory_space<vmem>>, vector<40x64xf32>
    %44 = arith.truncf %43 : vector<40x64xf32> to vector<40x64xbf16>
    %c4_47 = arith.constant 4 : index
    %c0_48 = arith.constant 0 : index
    %c0_49 = arith.constant 0 : index
    %45 = vector.load %arg2[%c4_47, %c0_48, %c0_49] : memref<5x64x128xbf16, #tpu.memory_space<vmem>>, vector<1x64x128xbf16>
    %46 = vector.shape_cast %45 : vector<1x64x128xbf16> to vector<64x128xbf16>
    %cst_50 = arith.constant dense<0.000000e+00> : vector<40x128xf32>
    %47 = tpu.matmul %44, %46, %cst_50 {dimension_numbers = #tpu.dot_dimension_numbers<[1], [0], [0], [1], [0, 0, 1, 1], [], []>} : vector<40x64xbf16>, vector<64x128xbf16>, vector<40x128xf32> -> vector<40x128xf32>
    %48 = arith.addf %42, %47 : vector<40x128xf32>
    %c0_51 = arith.constant 0 : index
    %c0_52 = arith.constant 0 : index
    %49 = vector.load %arg4[%c0_51, %c0_52] : memref<1x128xf32, #tpu.memory_space<vmem>>, vector<1x128xf32>
    %50 = vector.broadcast %49 : vector<1x128xf32> to vector<40x128xf32>
    %51 = arith.addf %48, %50 : vector<40x128xf32>
    %cst_53 = arith.constant 0.000000e+00 : f32
    %52 = vector.broadcast %cst_53 : f32 to vector<40x128xf32>
    %53 = arith.cmpf oge, %51, %52 : vector<40x128xf32>
    %c0_54 = arith.constant 0 : index
    %54 = memref.load %arg7[%c0_54] : memref<2xf32, #tpu.memory_space<smem>>
    %55 = vector.broadcast %54 : f32 to vector<40x128xf32>
    %56 = arith.mulf %55, %51 : vector<40x128xf32>
    %57 = arith.select %53, %51, %56 : vector<40x128xi1>, vector<40x128xf32>
    %58 = vector.extract_strided_slice %57 {offsets = [0, 0], sizes = [16, 128], strides = [1, 1]} : vector<40x128xf32> to vector<16x128xf32>
    %c2_55 = arith.constant 2 : index
    %c0_56 = arith.constant 0 : index
    %59 = vector.load %arg10[%c2_55, %c0_56] : memref<48x128xf32, #tpu.memory_space<vmem>>, vector<16x128xf32>
    tpu.vector_store %arg10[%c2_55, %c0_56], %58 {strides = array<i32>} : memref<48x128xf32, #tpu.memory_space<vmem>>, vector<16x128xf32>,
    %60 = vector.extract_strided_slice %57 {offsets = [24, 0], sizes = [16, 128], strides = [1, 1]} : vector<40x128xf32> to vector<16x128xf32>
    %c26_57 = arith.constant 26 : index
    %c0_58 = arith.constant 0 : index
    %61 = vector.load %arg10[%c26_57, %c0_58] : memref<48x128xf32, #tpu.memory_space<vmem>>, vector<16x128xf32>
    tpu.vector_store %arg10[%c26_57, %c0_58], %60 {strides = array<i32>} : memref<48x128xf32, #tpu.memory_space<vmem>>, vector<16x128xf32>,
    %cst_59 = arith.constant 0.000000e+00 : f32
    %62 = vector.broadcast %cst_59 : f32 to vector<40x128xf32>
    %c0_60 = arith.constant 0 : index
    %c0_61 = arith.constant 0 : index
    %63 = vector.load %arg10[%c0_60, %c0_61] : memref<48x128xf32, #tpu.memory_space<vmem>>, vector<40x128xf32>
    %64 = arith.truncf %63 : vector<40x128xf32> to vector<40x128xbf16>
    %c0_62 = arith.constant 0 : index
    %c0_63 = arith.constant 0 : index
    %c0_64 = arith.constant 0 : index
    %65 = vector.load %arg3[%c0_62, %c0_63, %c0_64] : memref<5x128x128xbf16, #tpu.memory_space<vmem>>, vector<1x128x128xbf16>
    %66 = vector.shape_cast %65 : vector<1x128x128xbf16> to vector<128x128xbf16>
    %cst_65 = arith.constant dense<0.000000e+00> : vector<40x128xf32>
    %67 = tpu.matmul %64, %66, %cst_65 {dimension_numbers = #tpu.dot_dimension_numbers<[1], [0], [0], [1], [0, 0, 1, 1], [], []>} : vector<40x128xbf16>, vector<128x128xbf16>, vector<40x128xf32> -> vector<40x128xf32>
    %68 = arith.addf %62, %67 : vector<40x128xf32>
    %c1_66 = arith.constant 1 : index
    %c0_67 = arith.constant 0 : index
    %69 = vector.load %arg10[%c1_66, %c0_67] : memref<48x128xf32, #tpu.memory_space<vmem>>, vector<40x128xf32>
    %70 = arith.truncf %69 : vector<40x128xf32> to vector<40x128xbf16>
    %c1_68 = arith.constant 1 : index
    %c0_69 = arith.constant 0 : index
    %c0_70 = arith.constant 0 : index
    %71 = vector.load %arg3[%c1_68, %c0_69, %c0_70] : memref<5x128x128xbf16, #tpu.memory_space<vmem>>, vector<1x128x128xbf16>
    %72 = vector.shape_cast %71 : vector<1x128x128xbf16> to vector<128x128xbf16>
    %cst_71 = arith.constant dense<0.000000e+00> : vector<40x128xf32>
    %73 = tpu.matmul %70, %72, %cst_71 {dimension_numbers = #tpu.dot_dimension_numbers<[1], [0], [0], [1], [0, 0, 1, 1], [], []>} : vector<40x128xbf16>, vector<128x128xbf16>, vector<40x128xf32> -> vector<40x128xf32>
    %74 = arith.addf %68, %73 : vector<40x128xf32>
    %c2_72 = arith.constant 2 : index
    %c0_73 = arith.constant 0 : index
    %75 = vector.load %arg10[%c2_72, %c0_73] : memref<48x128xf32, #tpu.memory_space<vmem>>, vector<40x128xf32>
    %76 = arith.truncf %75 : vector<40x128xf32> to vector<40x128xbf16>
    %c2_74 = arith.constant 2 : index
    %c0_75 = arith.constant 0 : index
    %c0_76 = arith.constant 0 : index
    %77 = vector.load %arg3[%c2_74, %c0_75, %c0_76] : memref<5x128x128xbf16, #tpu.memory_space<vmem>>, vector<1x128x128xbf16>
    %78 = vector.shape_cast %77 : vector<1x128x128xbf16> to vector<128x128xbf16>
    %cst_77 = arith.constant dense<0.000000e+00> : vector<40x128xf32>
    %79 = tpu.matmul %76, %78, %cst_77 {dimension_numbers = #tpu.dot_dimension_numbers<[1], [0], [0], [1], [0, 0, 1, 1], [], []>} : vector<40x128xbf16>, vector<128x128xbf16>, vector<40x128xf32> -> vector<40x128xf32>
    %80 = arith.addf %74, %79 : vector<40x128xf32>
    %c3_78 = arith.constant 3 : index
    %c0_79 = arith.constant 0 : index
    %81 = vector.load %arg10[%c3_78, %c0_79] : memref<48x128xf32, #tpu.memory_space<vmem>>, vector<40x128xf32>
    %82 = arith.truncf %81 : vector<40x128xf32> to vector<40x128xbf16>
    %c3_80 = arith.constant 3 : index
    %c0_81 = arith.constant 0 : index
    %c0_82 = arith.constant 0 : index
    %83 = vector.load %arg3[%c3_80, %c0_81, %c0_82] : memref<5x128x128xbf16, #tpu.memory_space<vmem>>, vector<1x128x128xbf16>
    %84 = vector.shape_cast %83 : vector<1x128x128xbf16> to vector<128x128xbf16>
    %cst_83 = arith.constant dense<0.000000e+00> : vector<40x128xf32>
    %85 = tpu.matmul %82, %84, %cst_83 {dimension_numbers = #tpu.dot_dimension_numbers<[1], [0], [0], [1], [0, 0, 1, 1], [], []>} : vector<40x128xbf16>, vector<128x128xbf16>, vector<40x128xf32> -> vector<40x128xf32>
    %86 = arith.addf %80, %85 : vector<40x128xf32>
    %c4_84 = arith.constant 4 : index
    %c0_85 = arith.constant 0 : index
    %87 = vector.load %arg10[%c4_84, %c0_85] : memref<48x128xf32, #tpu.memory_space<vmem>>, vector<40x128xf32>
    %88 = arith.truncf %87 : vector<40x128xf32> to vector<40x128xbf16>
    %c4_86 = arith.constant 4 : index
    %c0_87 = arith.constant 0 : index
    %c0_88 = arith.constant 0 : index
    %89 = vector.load %arg3[%c4_86, %c0_87, %c0_88] : memref<5x128x128xbf16, #tpu.memory_space<vmem>>, vector<1x128x128xbf16>
    %90 = vector.shape_cast %89 : vector<1x128x128xbf16> to vector<128x128xbf16>
    %cst_89 = arith.constant dense<0.000000e+00> : vector<40x128xf32>
    %91 = tpu.matmul %88, %90, %cst_89 {dimension_numbers = #tpu.dot_dimension_numbers<[1], [0], [0], [1], [0, 0, 1, 1], [], []>} : vector<40x128xbf16>, vector<128x128xbf16>, vector<40x128xf32> -> vector<40x128xf32>
    %92 = arith.addf %86, %91 : vector<40x128xf32>
    %c0_90 = arith.constant 0 : index
    %c0_91 = arith.constant 0 : index
    %93 = vector.load %arg5[%c0_90, %c0_91] : memref<1x128xf32, #tpu.memory_space<vmem>>, vector<1x128xf32>
    %94 = vector.broadcast %93 : vector<1x128xf32> to vector<40x128xf32>
    %95 = arith.addf %92, %94 : vector<40x128xf32>
    %c2_92 = arith.constant 2 : index
    %c0_93 = arith.constant 0 : index
    %96 = vector.load %arg9[%c2_92, %c0_93] : memref<48x64xf32, #tpu.memory_space<vmem>>, vector<40x64xf32>
    %97 = arith.truncf %96 : vector<40x64xf32> to vector<40x64xbf16>
    %c0_94 = arith.constant 0 : index
    %c0_95 = arith.constant 0 : index
    %98 = vector.load %arg6[%c0_94, %c0_95] : memref<64x128xbf16, #tpu.memory_space<vmem>>, vector<64x128xbf16>
    %cst_96 = arith.constant dense<0.000000e+00> : vector<40x128xf32>
    %99 = tpu.matmul %97, %98, %cst_96 {dimension_numbers = #tpu.dot_dimension_numbers<[1], [0], [0], [1], [0, 0, 1, 1], [], []>} : vector<40x64xbf16>, vector<64x128xbf16>, vector<40x128xf32> -> vector<40x128xf32>
    %100 = arith.addf %95, %99 : vector<40x128xf32>
    %cst_97 = arith.constant 0.000000e+00 : f32
    %101 = vector.broadcast %cst_97 : f32 to vector<40x128xf32>
    %102 = arith.cmpf oge, %100, %101 : vector<40x128xf32>
    %c1_98 = arith.constant 1 : index
    %103 = memref.load %arg7[%c1_98] : memref<2xf32, #tpu.memory_space<smem>>
    %104 = vector.broadcast %103 : f32 to vector<40x128xf32>
    %105 = arith.mulf %104, %100 : vector<40x128xf32>
    %106 = arith.select %102, %100, %105 : vector<40x128xi1>, vector<40x128xf32>
    %107 = vector.extract_strided_slice %106 {offsets = [0, 0], sizes = [16, 128], strides = [1, 1]} : vector<40x128xf32> to vector<16x128xf32>
    %c0_99 = arith.constant 0 : index
    %c0_100 = arith.constant 0 : index
    %c0_101 = arith.constant 0 : index
    %108 = vector.load %arg8[%c0_99, %c0_100, %c0_101] : memref<2x16x128xf32, #tpu.memory_space<vmem>>, vector<1x16x128xf32>
    %109 = vector.shape_cast %108 : vector<1x16x128xf32> to vector<16x128xf32>
    %110 = vector.shape_cast %107 : vector<16x128xf32> to vector<1x16x128xf32>
    tpu.vector_store %arg8[%c0_99, %c0_100, %c0_101], %110 {strides = array<i32>} : memref<2x16x128xf32, #tpu.memory_space<vmem>>, vector<1x16x128xf32>,
    %111 = vector.extract_strided_slice %106 {offsets = [24, 0], sizes = [16, 128], strides = [1, 1]} : vector<40x128xf32> to vector<16x128xf32>
    %c1_102 = arith.constant 1 : index
    %c0_103 = arith.constant 0 : index
    %c0_104 = arith.constant 0 : index
    %112 = vector.load %arg8[%c1_102, %c0_103, %c0_104] : memref<2x16x128xf32, #tpu.memory_space<vmem>>, vector<1x16x128xf32>
    %113 = vector.shape_cast %112 : vector<1x16x128xf32> to vector<16x128xf32>
    %114 = vector.shape_cast %111 : vector<16x128xf32> to vector<1x16x128xf32>
    tpu.vector_store %arg8[%c1_102, %c0_103, %c0_104], %114 {strides = array<i32>} : memref<2x16x128xf32, #tpu.memory_space<vmem>>, vector<1x16x128xf32>,
    return
  }
  func.func @transform_0(%arg0: i32) -> (i32, i32, i32) {
    %c0_i32 = arith.constant 0 : i32
    %c0_i32_0 = arith.constant 0 : i32
    %c0_i32_1 = arith.constant 0 : i32
    return %arg0, %c0_i32, %c0_i32_0 : i32, i32, i32
  }
  func.func @transform_1(%arg0: i32) -> (i32, i32, i32) {
    %c0_i32 = arith.constant 0 : i32
    %c0_i32_0 = arith.constant 0 : i32
    %c0_i32_1 = arith.constant 0 : i32
    %c0_i32_2 = arith.constant 0 : i32
    return %c0_i32, %c0_i32_0, %c0_i32_1 : i32, i32, i32
  }
  func.func @transform_2(%arg0: i32) -> (i32, i32, i32) {
    %c0_i32 = arith.constant 0 : i32
    %c0_i32_0 = arith.constant 0 : i32
    %c0_i32_1 = arith.constant 0 : i32
    %c0_i32_2 = arith.constant 0 : i32
    return %c0_i32, %c0_i32_0, %c0_i32_1 : i32, i32, i32
  }
  func.func @transform_3(%arg0: i32) -> (i32, i32) {
    %c0_i32 = arith.constant 0 : i32
    %c0_i32_0 = arith.constant 0 : i32
    %c0_i32_1 = arith.constant 0 : i32
    return %c0_i32, %c0_i32_0 : i32, i32
  }
  func.func @transform_4(%arg0: i32) -> (i32, i32) {
    %c0_i32 = arith.constant 0 : i32
    %c0_i32_0 = arith.constant 0 : i32
    %c0_i32_1 = arith.constant 0 : i32
    return %c0_i32, %c0_i32_0 : i32, i32
  }
  func.func @transform_5(%arg0: i32) -> (i32, i32) {
    %c0_i32 = arith.constant 0 : i32
    %c0_i32_0 = arith.constant 0 : i32
    %c0_i32_1 = arith.constant 0 : i32
    return %c0_i32, %c0_i32_0 : i32, i32
  }
  func.func @transform_6(%arg0: i32) -> i32 {
    %c0_i32 = arith.constant 0 : i32
    %c0_i32_0 = arith.constant 0 : i32
    return %c0_i32 : i32
  }
  func.func @transform_7(%arg0: i32) -> (i32, i32, i32) {
    %c0_i32 = arith.constant 0 : i32
    %c0_i32_0 = arith.constant 0 : i32
    %c0_i32_1 = arith.constant 0 : i32
    return %arg0, %c0_i32, %c0_i32_0 : i32, i32, i32
  }
}

</mosaic_0001>

<bundles_post_ra>
// kernel: tpu_custom_call.1
= control target key start
LH: loop header
LB: loop body
LE: loop exit
PB: predicated region body
PF: predicated region fallthrough
CT: control target
= control target key end

     0   :  { %12 = vsyncpa [#allocation5], 0  ;;  %s2428_s0 = inlined_call_operand.hbm [shape: f32[2,16,64], index: 0, kind: input, shape index: {}]   ;;  %s2429_s1 = inlined_call_operand.hbm [shape: bf16[5,64,128], index: 1, kind: input, shape index: {}]   ;;  %s2430_s2 = inlined_call_operand.hbm [shape: bf16[5,128,128], index: 2, kind: input, shape index: {}]   ;;  %s2431_s3 = inlined_call_operand.vmem [shape: f32[1,128], index: 3, kind: input, shape index: {}]   ;;  %s2432_s4 = inlined_call_operand.vmem [shape: f32[1,128], index: 4, kind: input, shape index: {}]   ;;  %s2433_s5 = inlined_call_operand.hbm [shape: bf16[64,128], index: 5, kind: input, shape index: {}]   ;;  %s2434_s6 = inlined_call_operand.vmem [shape: f32[2], index: 6, kind: input, shape index: {}]   ;;  %s2435_s7 = inlined_call_operand.hbm [shape: f32[2,16,128], index: 7, kind: output, shape index: {}]  }
   0x1   :  { %13 = vsyncpa [#allocation9], 0 }
   0x2   :  { %14 = vsyncpa [#allocation12], 0 }
   0x3   :  { %15 = vsyncpa [#allocation7], 0 }
   0x4   :  { %16 = vsyncpa [#allocation6], 0  ;;  %s2138_s24 = smov [#allocation8]  }
   0x5   :  { %s34_s25 = sshll.u32 %s2138_s24, 4  ;;  %s35_s25 = int_to_ptr.vmem [resolvable:$true] %s34_s25 }
   0x6   :  { %s2024_s26 = scalar_lea.vmem %s35_s25, 2560  ;;  %p2029_p1 = scmp.lt.s32.totalorder %s35_s25, %s35_s25 }
   0x7   :  { %p2025_p0 = scmp.ne.s32.totalorder %s35_s25, %s2024_s26  ;;  %p2030_p2 = scmp.lt.s32.totalorder %s2024_s26, %s2024_s26 }
   0x9   :  { %p2031_p3 = por %p2030_p2, %p2029_p1 }
   0xb   :  { %p2032_p4 = pnand %p2031_p3, %p2025_p0 }
   0xd   :  { %2035 = shalt.err (!%p2032_p4)
}
   0xe   :  { %s2139_s27 = smov 64   ;;  %s2140_s28 = smov 4  }
   0xf   :  { %40 = dma.hbm_to_vmem [thread:$0]  %s2429_s1, 2560, %s35_s25, [#allocation9], %s2139_s27, %s2139_s27, %s2140_s28  }
  0x10   :  { %s2141_s8 = smov [#allocation4]  }
  0x11   :  { %s22_s9 = sshll.u32 %s2141_s8, 4  ;;  %s23_s9 = int_to_ptr.vmem [resolvable:$true] %s22_s9 }
  0x12   :  { %s2044_s10 = scalar_lea.vmem %s23_s9, 512  ;;  %p2049_p6 = scmp.lt.s32.totalorder %s23_s9, %s23_s9 }
  0x13   :  { %p2045_p5 = scmp.ne.s32.totalorder %s23_s9, %s2044_s10  ;;  %p2050_p7 = scmp.lt.s32.totalorder %s2044_s10, %s2044_s10 }
  0x15   :  { %p2051_p8 = por %p2050_p7, %p2049_p6 }
  0x17   :  { %p2052_p9 = pnand %p2051_p8, %p2045_p5 }
  0x19   :  { %2055 = shalt.err (!%p2052_p9)
}
  0x1a   :  { %s2142_s11 = smov 128   ;;  %s2143_s12 = smov 8  }
  0x1b   :  { %28 = dma.hbm_to_vmem [thread:$0]  %s2428_s0, 512, %s23_s9, [#allocation5], %s2142_s11, %s2142_s11, %s2143_s12  }
  0x1c   :  { %s2144_s1 = smov [#allocation10]   ;;  %s2145_s16 = smov [#allocation11]  }
  0x1d   :  { %s46_s15 = sshll.u32 %s2144_s1, 4  ;;  %s62_s17 = sshll.u32 %s2145_s16, 4  ;;  %s47_s15 = int_to_ptr.vmem [resolvable:$true] %s46_s15  ;;  %s63_s17 = int_to_ptr.vmem [resolvable:$true] %s62_s17 }
  0x1e   :  { %s2064_s18 = scalar_lea.vmem %s47_s15, 5120  ;;  %p2069_p11 = scmp.lt.s32.totalorder %s47_s15, %s47_s15 }
  0x1f   :  { %p2065_p10 = scmp.ne.s32.totalorder %s47_s15, %s2064_s18  ;;  %p2070_p12 = scmp.lt.s32.totalorder %s2064_s18, %s2064_s18 }
  0x21   :  { %p2071_p13 = por %p2070_p12, %p2069_p11 }
  0x23   :  { %p2072_p0 = pnand %p2071_p13, %p2065_p10 }
  0x25   :  { %2075 = shalt.err (!%p2072_p0)
}
  0x26   :  { %52 = dma.hbm_to_vmem [thread:$0]  %s2430_s2, 5120, %s47_s15, [#allocation9], %s2139_s27, %s2139_s27, %s2140_s28  }
  0x27   :  { %s2084_s0 = scalar_lea.vmem %s63_s17, 512  ;;  %p2089_p2 = scmp.lt.s32.totalorder %s63_s17, %s63_s17 }
  0x28   :  { %p2085_p1 = scmp.ne.s32.totalorder %s63_s17, %s2084_s0  ;;  %p2090_p3 = scmp.lt.s32.totalorder %s2084_s0, %s2084_s0 }
  0x2a   :  { %p2091_p4 = por %p2090_p3, %p2089_p2 }
  0x2c   :  { %p2092_p5 = pnand %p2091_p4, %p2085_p1 }
  0x2e   :  { %2095 = shalt.err (!%p2092_p5)
}
  0x2f   :  { %68 = dma.hbm_to_vmem [thread:$0]  %s2433_s5, 512, %s63_s17, [#allocation12], %s2139_s27, %s2139_s27, %s2140_s28  }
  0x30   :  { %s75_s25 = sshll.u32 %s2434_s6, 4  ;;  %s76_s25 = int_to_ptr.vmem [resolvable:$true] %s75_s25 }
  0x31   :  { %s2096_s2 = scalar_lea.vmem %s76_s25, 16  ;;  %p2101_p7 = scmp.lt.s32.totalorder %s76_s25, %s76_s25 }
  0x32   :  { %p2097_p6 = scmp.ne.s32.totalorder %s76_s25, %s2096_s2  ;;  %p2102_p8 = scmp.lt.s32.totalorder %s2096_s2, %s2096_s2 }
  0x34   :  { %p2103_p9 = por %p2102_p8, %p2101_p7 }
  0x36   :  { %p2104_p10 = pnand %p2103_p9, %p2097_p6 }
  0x38   :  { %2107 = shalt.err (!%p2104_p10)
}
  0x39   :  { %s2146_s26 = smov [#allocation13]  }
  0x3a   :  { %78 = dma.vmem_to_smem %s76_s25, 16, %s2146_s26, [#allocation7]  }
  0x3b   :  { %2128 = dma.done.wait [#allocation5], 512  }
  0x3c   :  { %2129 = vsyncadd [#allocation5], 4294966784 }
  0x3d   :  { %2130 = dma.done.wait [#allocation9], 7680  }
  0x3e   :  { %2131 = vsyncadd [#allocation9], 4294959616 }
  0x3f   :  { %2132 = dma.done.wait [#allocation12], 512  }
  0x40   :  { %2133 = vsyncadd [#allocation12], 4294966784 }
  0x41   :  { %2134 = dma.done.wait [#allocation7], 16  }
  0x42   :  { %2135 = vsyncadd [#allocation7], 4294967280 }
  0x43   :  { %94 = sfence }
  0x44   :  { %v1952_v0 = vld [vmem:[#allocation8 + $0x38] sm:$0xff]   ;;  %v2147_v1 = vmov 0.0   ;;  %v1954_v3 = vld [vmem:[#allocation8 + $0x30] sm:$0xff]   ;;  %vm2148_vm0 = vmmov 0   ;;  %vm96_vm1 = vcmask 517120   ;;  %vm98_vm2 = vcmask 521216  }
  0x45   :  { %1672 = vmatprep.subr.bf16.mxu0 %v2147_v1  ;;  %105 = vst [vmem:[#allocation3] sm:$0x3] %v2147_v1  ;;  %106 = vst [vmem:[#allocation3 + $0x12] sm:$0x3f] %v2147_v1  ;;  %1692 = vmatprep.subr.bf16.mxu1 %v2147_v1  ;;  %v1953_v2 = vld [vmem:[#allocation8 + $0x18] sm:$0xff]   ;;  %v1955_v4 = vld [vmem:[#allocation8 + $0x10] sm:$0xff]  }
  0x46   :  { %114 = vst [vmem:[#allocation3 + $0x18] sm:$0x3] %v2147_v1  ;;  %115 = vst [vmem:[#allocation3 + $0x2a] sm:$0x3f] %v2147_v1  ;;  %1673 = vmatpush3.bf16.msra.mxu0 %v1952_v0  ;;  %1680 = vmatprep.mubr.msk.bf16.mxu0 %vm2148_vm0, %v2147_v1  ;;  %v1956_v5 = vld [vmem:[#allocation8 + $0x28] sm:$0xff]   ;;  %vm102_vm3 = vcmask 523264  }
  0x47   :  { %1693 = vmatpush3.bf16.msra.mxu1 %v1953_v2  ;;  %1674 = vmatprep.subr.bf16.mxu0 %v2147_v1  ;;  %97 = vst.msk [vmem:[#allocation2] sm:$0x3] %vm96_vm1, %v2147_v1  ;;  %107 = vst.msk [vmem:[#allocation2 + $0x18] sm:$0x3] %vm96_vm1, %v2147_v1  ;;  %v1957_v6 = vld [vmem:[#allocation8 + $0x8] sm:$0xff]   ;;  %v100_v7 = vld [vmem:[#allocation4] sm:$0xff] }
  0x48   :  { %1694 = vmatprep.subr.bf16.mxu1 %v2147_v1  ;;  %1700 = vmatprep.mubr.msk.bf16.mxu1 %vm2148_vm0, %v2147_v1  ;;  %99 = vst.msk [vmem:[#allocation2 + $0x12] sm:$0x3f] %vm98_vm2, %v2147_v1  ;;  %108 = vst.msk [vmem:[#allocation2 + $0x2a] sm:$0x3f] %vm98_vm2, %v2147_v1  ;;  %v101_v8 = vld [vmem:[#allocation4 + $0x8] sm:$0xff]  ;;  %v1958_v9 = vld [vmem:[#allocation8 + $0x20] sm:$0xff]  }
  0x49   :  { %103 = vst.msk [vmem:[#allocation2 + $0x2] sm:$0xff] %vm102_vm3, %v100_v7  ;;  %104 = vst.msk [vmem:[#allocation2 + $0xa] sm:$0xff] %vm102_vm3, %v101_v8  ;;  %v110_v10 = vld [vmem:[#allocation4 + $0x10] sm:$0xff]  ;;  %v1959_v11 = vld [vmem:[#allocation8] sm:$0xff]   ;;  %s667_s5 = sld [smem:[#allocation13]] }
  0x4a   :  { %1675 = vmatpush3.bf16.msra.mxu0 %v1954_v3  ;;  %112 = vst.msk [vmem:[#allocation2 + $0x1a] sm:$0xff] %vm102_vm3, %v110_v10  ;;  %v111_v12 = vld [vmem:[#allocation4 + $0x18] sm:$0xff]  ;;  %v1961_v21 = vld [vmem:[#allocation8 + $0x50] sm:$0xff]   ;;  %v1963_v29 = vld [vmem:[#allocation8 + $0x48] sm:$0xff]  }
  0x4b   :  { %1695 = vmatpush3.bf16.msra.mxu1 %v1955_v4  ;;  %1676 = vmatprep.subr.bf16.mxu0 %v2147_v1  ;;  %v1960_v13 = vld [vmem:[#allocation8 + $0x58] sm:$0xff]   ;;  %113 = vst.msk [vmem:[#allocation2 + $0x22] sm:$0xff] %vm102_vm3, %v111_v12  ;;  %v1964_v26 = vld [vmem:[#allocation8 + $0x70] sm:$0xff]   ;;  %v1966_v30 = vld [vmem:[#allocation8 + $0x68] sm:$0xff]  }
  0x4c   :  { %1696 = vmatprep.subr.bf16.mxu1 %v2147_v1  ;;  %v1962_v20 = vld [vmem:[#allocation8 + $0x78] sm:$0xff]   ;;  %v1965_v32 = vld [vmem:[#allocation8 + $0x40] sm:$0xff]   ;;  %v1969_v44 = vld [vmem:[#allocation8 + $0x90] sm:$0xff]  }
  0x4d   :  { %v1967_v34 = vld [vmem:[#allocation8 + $0x60] sm:$0xff]   ;;  %v1968_v41 = vld [vmem:[#allocation8 + $0x98] sm:$0xff]   ;;  %v1970_v49 = vld [vmem:[#allocation8 + $0x88] sm:$0xff]  }
  0x4e   :  { %1677 = vmatpush3.bf16.msra.mxu0 %v1956_v5  ;;  %v1971_v53 = vld [vmem:[#allocation8 + $0x80] sm:$0xff]   ;;  %v1972_v2 = vld [vmem:[#allocation10 + $0x78] sm:$0xff]   ;;  %v1974_v4 = vld [vmem:[#allocation10 + $0x70] sm:$0xff]  }
  0x4f   :  { %1697 = vmatpush3.bf16.msra.mxu1 %v1957_v6  ;;  %1678 = vmatprep.subr.bf16.mxu0 %v2147_v1  ;;  %v327_v45 = vld [vmem:[#allocation2 + $0x12] sm:$0xff]  ;;  %v1976_v6 = vld [vmem:[#allocation10 + $0x68] sm:$0xff]   ;;  %v1978_v8 = vld [vmem:[#allocation10 + $0x60] sm:$0xff]  }
  0x50   :  { %1698 = vmatprep.subr.bf16.mxu1 %v2147_v1  ;;  %v132_v14 = vld [vmem:[#allocation2 + $0x1] sm:$0xff]  ;;  %v133_v15 = vld [vmem:[#allocation2 + $0x9] sm:$0xff]  ;;  %v134_v22 = vld [vmem:[#allocation2 + $0x11] sm:$0xff] }
  0x51   :  { %v116_v16 = vld [vmem:[#allocation2] sm:$0xff]  ;;  %v137_v17 = vpack.c.bf16 %v133_v15, %v132_v14  ;;  %v117_v18 = vld [vmem:[#allocation2 + $0x8] sm:$0xff]  ;;  %v118_v24 = vld [vmem:[#allocation2 + $0x10] sm:$0xff] }
  0x52   :  { %1679 = vmatpush3.bf16.msra.mxu0 %v1958_v9  ;;  %v121_v19 = vpack.c.bf16 %v117_v18, %v116_v16  ;;  %v135_v23 = vld [vmem:[#allocation2 + $0x19] sm:$0xff]  ;;  %v136_v31 = vld [vmem:[#allocation2 + $0x21] sm:$0xff]  ;;  %v326_v38 = vld [vmem:[#allocation2 + $0xa] sm:$0xff] }
  0x53   :  { %1699 = vmatpush3.bf16.msra.mxu1 %v1959_v11  ;;  %1712 = vmatprep.subr.bf16.mxu0 %v2147_v1  ;;  %v119_v25 = vld [vmem:[#allocation2 + $0x18] sm:$0xff]  ;;  %v138_v27 = vpack.c.bf16 %v135_v23, %v134_v22  ;;  %v120_v33 = vld [vmem:[#allocation2 + $0x20] sm:$0xff]  ;;  %v139_v35 = vpack.c.bf16 %v136_v31, %v136_v31  ;;  %v435_v40 = vld [vmem:[#allocation2 + $0xb] sm:$0xff] }
  0x54   :  { %1732 = vmatprep.subr.bf16.mxu1 %v2147_v1  ;;  %v122_v28 = vpack.c.bf16 %v119_v25, %v118_v24  ;;  %v123_v36 = vpack.c.bf16 %v120_v33, %v120_v33  ;;  %v325_v37 = vld [vmem:[#allocation2 + $0x2] sm:$0xff]  ;;  %v328_v46 = vld [vmem:[#allocation2 + $0x1a] sm:$0xff]  ;;  %v544_v58 = vld [vmem:[#allocation2 + $0xc] sm:$0xff] }
  0x55   :  { %1681 = vmatmul.mubr.msk.bf16.vlgmr.msra.gmra.mxu0 %vm102_vm3, %v137_v17  ;;  %v434_v39 = vld [vmem:[#allocation2 + $0x3] sm:$0xff]  ;;  %v2269_v42 = vpack.c.bf16 %v326_v38, %v325_v37  ;;  %v436_v47 = vld [vmem:[#allocation2 + $0x13] sm:$0xff]  ;;  %v437_v48 = vld [vmem:[#allocation2 + $0x1b] sm:$0xff]  ;;  %v2279_v50 = vpack.c.bf16 %v328_v46, %v327_v45 }
  0x56   :  { %1701 = vmatmul.mubr.msk.bf16.vlgmr.msra.gmra.mxu1 %vm102_vm3, %v121_v19  ;;  %1713 = vmatpush3.bf16.msra.mxu0 %v1960_v13  ;;  %v439_v43 = vpack.c.bf16 %v435_v40, %v434_v39  ;;  %v440_v51 = vpack.c.bf16 %v437_v48, %v436_v47  ;;  %v329_v52 = vld [vmem:[#allocation2 + $0x22] sm:$0xff]  ;;  %v545_v60 = vld [vmem:[#allocation2 + $0x14] sm:$0xff] }
  0x57   :  { %1714 = vmatprep.subr.bf16.mxu0 %v2147_v1  ;;  %1684 = vmatprep.mubr.msk.bf16.mxu0 %vm2148_vm0, %v2147_v1  ;;  %v438_v54 = vld [vmem:[#allocation2 + $0x23] sm:$0xff]  ;;  %v2290_v55 = vpack.c.bf16 %v329_v52, %v329_v52  ;;  %v1973_v3 = vld [vmem:[#allocation10 + $0x38] sm:$0xff]   ;;  %v1975_v5 = vld [vmem:[#allocation10 + $0x30] sm:$0xff]  }
  0x58   :  { %1704 = vmatprep.mubr.msk.bf16.mxu1 %vm2148_vm0, %v2147_v1  ;;  %1733 = vmatpush3.bf16.msra.mxu1 %v1962_v20  ;;  %v441_v56 = vpack.c.bf16 %v438_v54, %v438_v54  ;;  %v543_v57 = vld [vmem:[#allocation2 + $0x4] sm:$0xff]  ;;  %v546_v61 = vld [vmem:[#allocation2 + $0x1c] sm:$0xff]  ;;  %v1982_v12 = vld [vmem:[#allocation10 + $0x50] sm:$0xff]  }
  0x59   :  { %1734 = vmatprep.subr.bf16.mxu1 %v2147_v1  ;;  %v548_v59 = vpack.c.bf16 %v544_v58, %v543_v57  ;;  %v549_v62 = vpack.c.bf16 %v546_v61, %v545_v60  ;;  %v547_v63 = vld [vmem:[#allocation2 + $0x24] sm:$0xff]  ;;  %v1980_v10 = vld [vmem:[#allocation10 + $0x58] sm:$0xff]   ;;  %v1983_v13 = vld [vmem:[#allocation10 + $0x10] sm:$0xff]  }
  0x5a   :  { %1715 = vmatpush3.bf16.msra.mxu0 %v1961_v21  ;;  %v550_v0 = vpack.c.bf16 %v547_v63, %v547_v63  ;;  %v1977_v7 = vld [vmem:[#allocation10 + $0x28] sm:$0xff]   ;;  %v1979_v9 = vld [vmem:[#allocation10 + $0x20] sm:$0xff]   ;;  %v1981_v11 = vld [vmem:[#allocation10 + $0x18] sm:$0xff]  }
  0x5b   :  { %1716 = vmatprep.subr.bf16.mxu0 %v2147_v1  ;;  %v1984_v14 = vld [vmem:[#allocation10 + $0x48] sm:$0xff]   ;;  %v1986_v16 = vld [vmem:[#allocation10 + $0x40] sm:$0xff]  }
  0x5c   :  { %1735 = vmatpush3.bf16.msra.mxu1 %v1964_v26  ;;  %v1985_v15 = vld [vmem:[#allocation10 + $0x8] sm:$0xff]   ;;  %v1987_v17 = vld [vmem:[#allocation10] sm:$0xff]  }
  0x5d   :  { %1685 = vmatmul.mubr.msk.bf16.gmra.mxu0 %vm102_vm3, %v138_v27  ;;  %1736 = vmatprep.subr.bf16.mxu1 %v2147_v1 }
  0x5e   :  { %1705 = vmatmul.mubr.msk.bf16.gmra.mxu1 %vm102_vm3, %v122_v28  ;;  %1717 = vmatpush3.bf16.msra.mxu0 %v1963_v29 }
  0x5f   :  { %1688 = vmatprep.mubr.msk.bf16.mxu0 %vm2148_vm0, %v2147_v1  ;;  %1708 = vmatprep.mubr.msk.bf16.mxu1 %vm2148_vm0, %v2147_v1 }
  0x60   :  { %1718 = vmatprep.subr.bf16.mxu0 %v2147_v1  ;;  %1737 = vmatpush3.bf16.msra.mxu1 %v1966_v30 }
  0x61   :  { %1738 = vmatprep.subr.bf16.mxu1 %v2147_v1 }
  0x62   :  { %1719 = vmatpush3.bf16.msra.mxu0 %v1965_v32 }
  0x63   :  { %1752 = vmatprep.subr.bf16.mxu0 %v2147_v1 }
  0x64   :  { %1739 = vmatpush3.bf16.msra.mxu1 %v1967_v34 }
  0x65   :  { %1689 = vmatmul.mubr.msk.bf16.gmra.mxu0 %vm102_vm3, %v139_v35  ;;  %1772 = vmatprep.subr.bf16.mxu1 %v2147_v1 }
  0x66   :  { %1709 = vmatmul.mubr.msk.bf16.gmra.mxu1 %vm102_vm3, %v123_v36  ;;  %1720 = vmatprep.mubr.msk.bf16.mxu0 %vm2148_vm0, %v2147_v1 }
  0x67   :  { %1740 = vmatprep.mubr.msk.bf16.mxu1 %vm2148_vm0, %v2147_v1 }
  0x6d   :  { %1721 = vmatmul.mubr.msk.bf16.vlgmr.msra.gmra.mxu0 %vm102_vm3, %v2269_v42 }
  0x6e   :  { %1753 = vmatpush3.bf16.msra.mxu0 %v1968_v41  ;;  %1741 = vmatmul.mubr.msk.bf16.vlgmr.msra.gmra.mxu1 %vm102_vm3, %v439_v43 }
  0x6f   :  { %1754 = vmatprep.subr.bf16.mxu0 %v2147_v1  ;;  %1724 = vmatprep.mubr.msk.bf16.mxu0 %vm2148_vm0, %v2147_v1 }
  0x70   :  { %1744 = vmatprep.mubr.msk.bf16.mxu1 %vm2148_vm0, %v2147_v1  ;;  %1773 = vmatpush3.bf16.msra.mxu1 %v1972_v2 }
  0x71   :  { %1774 = vmatprep.subr.bf16.mxu1 %v2147_v1 }
  0x72   :  { %1755 = vmatpush3.bf16.msra.mxu0 %v1969_v44 }
  0x73   :  { %1756 = vmatprep.subr.bf16.mxu0 %v2147_v1 }
  0x74   :  { %1775 = vmatpush3.bf16.msra.mxu1 %v1974_v4 }
  0x75   :  { %1725 = vmatmul.mubr.msk.bf16.gmra.mxu0 %vm102_vm3, %v2279_v50  ;;  %1776 = vmatprep.subr.bf16.mxu1 %v2147_v1 }
  0x76   :  { %1745 = vmatmul.mubr.msk.bf16.gmra.mxu1 %vm102_vm3, %v440_v51  ;;  %1757 = vmatpush3.bf16.msra.mxu0 %v1970_v49 }
  0x77   :  { %1728 = vmatprep.mubr.msk.bf16.mxu0 %vm2148_vm0, %v2147_v1  ;;  %1748 = vmatprep.mubr.msk.bf16.mxu1 %vm2148_vm0, %v2147_v1 }
  0x78   :  { %1758 = vmatprep.subr.bf16.mxu0 %v2147_v1  ;;  %1777 = vmatpush3.bf16.msra.mxu1 %v1976_v6 }
  0x79   :  { %1778 = vmatprep.subr.bf16.mxu1 %v2147_v1 }
  0x7a   :  { %1759 = vmatpush3.bf16.msra.mxu0 %v1971_v53 }
  0x7b   :  { %1800 = vmatprep.subr.bf16.mxu0 %v2147_v1 }
  0x7c   :  { %1779 = vmatpush3.bf16.msra.mxu1 %v1978_v8 }
  0x7d   :  { %1729 = vmatmul.mubr.msk.bf16.gmra.mxu0 %vm102_vm3, %v2290_v55  ;;  %1780 = vmatprep.subr.bf16.mxu1 %v2147_v1 }
  0x7e   :  { %1749 = vmatmul.mubr.msk.bf16.gmra.mxu1 %vm102_vm3, %v441_v56  ;;  %1760 = vmatprep.mubr.msk.bf16.mxu0 %vm2148_vm0, %v2147_v1 }
  0x7f   :  { %1788 = vmatprep.mubr.msk.bf16.mxu1 %vm2148_vm0, %v2147_v1 }
  0x80   :  { %1781 = vmatpush3.bf16.msra.mxu1 %v1980_v10 }
  0x81   :  { %1782 = vmatprep.subr.bf16.mxu1 %v2147_v1 }
  0x84   :  { %1783 = vmatpush3.bf16.msra.mxu1 %v1982_v12  ;;  %v1525_v12 = vld [vmem:[%s2431_s3] ss:$0 sm:$0xff]  ;;  %s1574_s3 = sld [smem:[#allocation13 + $0x1]] }
  0x85   :  { %1761 = vmatmul.mubr.msk.bf16.vlgmr.msra.gmra.mxu0 %vm102_vm3, %v548_v59  ;;  %1784 = vmatprep.subr.bf16.mxu1 %v2147_v1 }
  0x86   :  { %1764 = vmatprep.mubr.msk.bf16.mxu0 %vm2148_vm0, %v2147_v1  ;;  %1801 = vmatpush3.bf16.msra.mxu0 %v1973_v3 }
  0x87   :  { %1802 = vmatprep.subr.bf16.mxu0 %v2147_v1 }
  0x88   :  { %1785 = vmatpush3.bf16.msra.mxu1 %v1984_v14  ;;  %v668_v14 = vstv %s667_s5 }
  0x89   :  { %1786 = vmatprep.subr.bf16.mxu1 %v2147_v1 }
  0x8a   :  { %1803 = vmatpush3.bf16.msra.mxu0 %v1975_v5 }
  0x8b   :  { %1804 = vmatprep.subr.bf16.mxu0 %v2147_v1 }
  0x8c   :  { %1787 = vmatpush3.bf16.msra.mxu1 %v1986_v16 }
  0x8d   :  { %1765 = vmatmul.mubr.msk.bf16.gmra.mxu0 %vm102_vm3, %v549_v62  ;;  %1828 = vmatprep.subr.bf16.mxu1 %v2147_v1 }
  0x8e   :  { %1768 = vmatprep.mubr.msk.bf16.mxu0 %vm2148_vm0, %v2147_v1  ;;  %1805 = vmatpush3.bf16.msra.mxu0 %v1977_v7 }
  0x8f   :  { %1806 = vmatprep.subr.bf16.mxu0 %v2147_v1 }
  0x92   :  { %1807 = vmatpush3.bf16.msra.mxu0 %v1979_v9 }
  0x93   :  { %1808 = vmatprep.subr.bf16.mxu0 %v2147_v1 }
  0x95   :  { %1769 = vmatmul.mubr.msk.bf16.gmra.mxu0 %vm102_vm3, %v550_v0 }
  0x96   :  { %1816 = vmatprep.mubr.msk.bf16.mxu0 %vm2148_vm0, %v2147_v1  ;;  %1809 = vmatpush3.bf16.msra.mxu0 %v1981_v11 }
  0x97   :  { %1810 = vmatprep.subr.bf16.mxu0 %v2147_v1 }
  0x9a   :  { %1811 = vmatpush3.bf16.msra.mxu0 %v1983_v13 }
  0x9b   :  { %1812 = vmatprep.subr.bf16.mxu0 %v2147_v1 }
  0x9e   :  { %1813 = vmatpush3.bf16.msra.mxu0 %v1985_v15 }
  0x9f   :  { %1814 = vmatprep.subr.bf16.mxu0 %v2147_v1 }
  0xa2   :  { %1815 = vmatpush3.bf16.msra.mxu0 %v1987_v17 }
  0xa3   :  { %1856 = vmatprep.subr.bf16.mxu0 %v2147_v1 }
 0x115   :  { %v216_v18 = vpop.f32.mrf.mxu0 }
 0x116   :  { %v304_v19 = vpop.f32.mrf.mxu1 }
 0x117   :  { %v1682_v20 = vpop.f32.mrf.mxu0  ;;  %v305_v62 = vadd.f32 %v304_v19, %v216_v18 }
 0x118   :  { %v1702_v21 = vpop.f32.mrf.mxu1 }
 0x119   :  { %v219_v22 = vpop.f32.mrf.mxu0 }
 0x11a   :  { %v307_v23 = vpop.f32.mrf.mxu1 }
 0x11b   :  { %v1683_v24 = vpop.f32.mrf.mxu0  ;;  %v308_v5 = vadd.f32 %v307_v23, %v219_v22 }
 0x11c   :  { %v1703_v25 = vpop.f32.mrf.mxu1 }
 0x11d   :  { %v224_v26 = vpop.f32.mrf.mxu0 }
 0x11e   :  { %v312_v27 = vpop.f32.mrf.mxu1 }
 0x11f   :  { %v1686_v28 = vpop.f32.mrf.mxu0 }
 0x120   :  { %v1706_v29 = vpop.f32.mrf.mxu1 }
 0x121   :  { %v226_v30 = vpop.f32.mrf.mxu0 }
 0x122   :  { %v314_v31 = vpop.f32.mrf.mxu1 }
 0x123   :  { %v1687_v32 = vpop.f32.mrf.mxu0  ;;  %v315_v19 = vadd.f32 %v314_v31, %v226_v30 }
 0x124   :  { %v1707_v33 = vpop.f32.mrf.mxu1 }
 0x125   :  { %v231_v34 = vpop.f32.mrf.mxu0 }
 0x126   :  { %v319_v35 = vpop.f32.mrf.mxu1 }
 0x127   :  { %v1690_v36 = vpop.f32.mrf.mxu0  ;;  %v320_v27 = vadd.f32 %v319_v35, %v231_v34  ;;  %v1988_v34 = vld [vmem:[#allocation10 + $0xb8] sm:$0xff]  }
 0x128   :  { %v1710_v37 = vpop.f32.mrf.mxu1  ;;  %v1989_v35 = vld [vmem:[#allocation10 + $0xf8] sm:$0xff]  }
 0x129   :  { %v234_v38 = vpop.f32.mrf.mxu0 }
 0x12a   :  { %v322_v39 = vpop.f32.mrf.mxu1 }
 0x12b   :  { %v1691_v40 = vpop.f32.mrf.mxu0 }
 0x12c   :  { %v1711_v41 = vpop.f32.mrf.mxu1 }
 0x12d   :  { %v409_v43 = vpop.f32.mrf.mxu0 }
 0x12e   :  { %v518_v44 = vpop.f32.mrf.mxu1  ;;  %v430_v2 = vadd.f32 %v409_v43, %v305_v62  ;;  %v1992_v62 = vld [vmem:[#allocation10 + $0xa8] sm:$0xff]  }
 0x12f   :  { %v1722_v45 = vpop.f32.mrf.mxu0 }
 0x130   :  { %v1742_v46 = vpop.f32.mrf.mxu1  ;;  %v539_v8 = vadd.f32 %v518_v44, %v430_v2 }
 0x131   :  { %v412_v47 = vpop.f32.mrf.mxu0 }
 0x132   :  { %v521_v48 = vpop.f32.mrf.mxu1  ;;  %v431_v9 = vadd.f32 %v412_v47, %v308_v5 }
 0x133   :  { %v1723_v49 = vpop.f32.mrf.mxu0 }
 0x134   :  { %v1743_v51 = vpop.f32.mrf.mxu1  ;;  %v540_v16 = vadd.f32 %v521_v48, %v431_v9 }
 0x135   :  { %v417_v52 = vpop.f32.mrf.mxu0 }
 0x136   :  { %v526_v53 = vpop.f32.mrf.mxu1 }
 0x137   :  { %v1726_v54 = vpop.f32.mrf.mxu0 }
 0x138   :  { %v1746_v56 = vpop.f32.mrf.mxu1 }
 0x139   :  { %v419_v57 = vpop.f32.mrf.mxu0 }
 0x13a   :  { %v528_v58 = vpop.f32.mrf.mxu1  ;;  %v432_v23 = vadd.f32 %v419_v57, %v315_v19  ;;  %v2003_v19 = vld [vmem:[#allocation10 + $0xc0] sm:$0xff]  }
 0x13b   :  { %v1727_v59 = vpop.f32.mrf.mxu0 }
 0x13c   :  { %v1747_v60 = vpop.f32.mrf.mxu1  ;;  %v541_v32 = vadd.f32 %v528_v58, %v432_v23  ;;  %v1990_v59 = vld [vmem:[#allocation10 + $0xb0] sm:$0xff]  }
 0x13d   :  { %v424_v61 = vpop.f32.mrf.mxu0  ;;  %v1991_v60 = vld [vmem:[#allocation10 + $0xf0] sm:$0xff]  }
 0x13e   :  { %v533_v63 = vpop.f32.mrf.mxu1  ;;  %v433_v33 = vadd.f32 %v424_v61, %v320_v27  ;;  %v2005_v27 = vld [vmem:[#allocation10 + $0x130] sm:$0xff]  }
 0x13f   :  { %v1730_v0 = vpop.f32.mrf.mxu0 }
 0x140   :  { %v1750_v3 = vpop.f32.mrf.mxu1  ;;  %v542_v38 = vadd.f32 %v533_v63, %v433_v33  ;;  %v1993_v63 = vld [vmem:[#allocation10 + $0xe8] sm:$0xff]  }
 0x141   :  { %v427_v4 = vpop.f32.mrf.mxu0  ;;  %v2006_v33 = vld [vmem:[#allocation10 + $0x128] sm:$0xff]  }
 0x142   :  { %v536_v6 = vpop.f32.mrf.mxu1 }
 0x143   :  { %v1731_v7 = vpop.f32.mrf.mxu0  ;;  %v1994_v6 = vld [vmem:[#allocation10 + $0xa0] sm:$0xff]  }
 0x144   :  { %v1751_v10 = vpop.f32.mrf.mxu1  ;;  %v1995_v7 = vld [vmem:[#allocation10 + $0xe0] sm:$0xff]  }
 0x145   :  { %v627_v11 = vpop.f32.mrf.mxu0  ;;  %v1996_v10 = vld [vmem:[#allocation10 + $0x98] sm:$0xff]  }
 0x146   :  { %v648_v13 = vadd.f32 %v627_v11, %v539_v8  ;;  %v1997_v11 = vld [vmem:[#allocation10 + $0xd8] sm:$0xff]  }
 0x147   :  { %v1762_v15 = vpop.f32.mrf.mxu0 }
 0x148   :  { %v659_v17 = vadd.f32 %v1525_v12, %v648_v13  ;;  %v1999_v15 = vld [vmem:[#allocation10 + $0xd0] sm:$0xff]  }
 0x149   :  { %v630_v18 = vpop.f32.mrf.mxu0 }
 0x14a   :  { %vm663_vm4 = vcmp.ge.f32.partialorder %v659_v17, 0.0  ;;  %v669_v20 = vmul.f32 %v668_v14, %v659_v17  ;;  %v649_v21 = vadd.f32 %v630_v18, %v540_v16  ;;  %v2000_v16 = vld [vmem:[#allocation10 + $0x88] sm:$0xff]   ;;  %v2002_v18 = vld [vmem:[#allocation10 + $0x80] sm:$0xff]  }
 0x14b   :  { %v1763_v22 = vpop.f32.mrf.mxu0 }
 0x14c   :  { %v2328_v24 = vsel %vm663_vm4, %v659_v17, %v669_v20  ;;  %v660_v25 = vadd.f32 %v1525_v12, %v649_v21  ;;  %v2001_v17 = vld [vmem:[#allocation10 + $0xc8] sm:$0xff]   ;;  %v2004_v22 = vld [vmem:[#allocation10 + $0x138] sm:$0xff]  }
 0x14d   :  { %677 = vst [vmem:[#allocation3 + $0x2] sm:$0xff] %v2328_v24  ;;  %v635_v26 = vpop.f32.mrf.mxu0 }
 0x14e   :  { %vm664_vm5 = vcmp.ge.f32.partialorder %v660_v25, 0.0  ;;  %v670_v28 = vmul.f32 %v668_v14, %v660_v25  ;;  %v2010_v26 = vld [vmem:[#allocation11 + $0x18] sm:$0xff]  }
 0x14f   :  { %v1766_v29 = vpop.f32.mrf.mxu0 }
 0x150   :  { %v2331_v36 = vsel %vm664_vm5, %v660_v25, %v670_v28  ;;  %v938_v28 = vld [vmem:[#allocation3 + $0x12] sm:$0xff]  ;;  %v2012_v29 = vld [vmem:[#allocation11 + $0x10] sm:$0xff]  }
 0x151   :  { %678 = vst [vmem:[#allocation3 + $0xa] sm:$0xff] %v2331_v36  ;;  %v637_v30 = vpop.f32.mrf.mxu0  ;;  %v941_v23 = vpack.c.bf16 %v2331_v36, %v2328_v24 }
 0x152   :  { %v650_v31 = vadd.f32 %v637_v30, %v541_v32 }
 0x153   :  { %v1767_v37 = vpop.f32.mrf.mxu0 }
 0x154   :  { %v661_v39 = vadd.f32 %v1525_v12, %v650_v31  ;;  %v705_v44 = vld [vmem:[#allocation3 + $0x1] sm:$0xff]  ;;  %v2014_v31 = vld [vmem:[#allocation11 + $0x8] sm:$0xff]   ;;  %v2007_v37 = vld [vmem:[#allocation10 + $0x120] sm:$0xff]  }
 0x155   :  { %v642_v40 = vpop.f32.mrf.mxu0  ;;  %v681_v49 = vld [vmem:[#allocation3] sm:$0xff] }
 0x156   :  { %vm665_vm6 = vcmp.ge.f32.partialorder %v661_v39, 0.0  ;;  %v671_v41 = vmul.f32 %v668_v14, %v661_v39  ;;  %v651_v43 = vadd.f32 %v642_v40, %v542_v38 }
 0x157   :  { %v1770_v45 = vpop.f32.mrf.mxu0 }
 0x158   :  { %v2334_v46 = vsel %vm665_vm6, %v661_v39, %v671_v41  ;;  %v662_v47 = vadd.f32 %v1525_v12, %v651_v43  ;;  %v706_v48 = vld [vmem:[#allocation3 + $0x9] sm:$0xff]  ;;  %v707_v61 = vld [vmem:[#allocation3 + $0x11] sm:$0xff] }
 0x159   :  { %v682_v51 = vld [vmem:[#allocation3 + $0x8] sm:$0xff]  ;;  %679 = vst [vmem:[#allocation3 + $0x1a] sm:$0xff] %v2334_v46  ;;  %v710_v52 = vpack.c.bf16 %v706_v48, %v705_v44  ;;  %v645_v54 = vpop.f32.mrf.mxu0  ;;  %v683_v2 = vld [vmem:[#allocation3 + $0x10] sm:$0xff]  ;;  %v942_v36 = vpack.c.bf16 %v2334_v46, %v938_v28  ;;  %v2009_v44 = vld [vmem:[#allocation10 + $0x110] sm:$0xff]  }
 0x15a   :  { %v686_v53 = vpack.c.bf16 %v682_v51, %v681_v49  ;;  %vm666_vm7 = vcmp.ge.f32.partialorder %v662_v47, 0.0  ;;  %v672_v56 = vmul.f32 %v668_v14, %v662_v47  ;;  %v1998_v14 = vld [vmem:[#allocation10 + $0x90] sm:$0xff]   ;;  %v1069_v21 = vld [vmem:[#allocation3 + $0xb] sm:$0xff] }
 0x15b   :  { %1789 = vmatmul.mubr.bf16.vlgmr.msra.gmra.mxu1 %v710_v52  ;;  %v1771_v57 = vpop.f32.mrf.mxu0  ;;  %v1068_v20 = vld [vmem:[#allocation3 + $0x3] sm:$0xff]  ;;  %v2015_v43 = vld [vmem:[#allocation11] sm:$0xff]  }
 0x15c   :  { %1817 = vmatmul.mubr.bf16.vlgmr.msra.gmra.mxu0 %v686_v53  ;;  %v2337_v58 = vsel %vm666_vm7, %v662_v47, %v672_v56  ;;  %1829 = vmatpush3.bf16.msra.mxu1 %v1988_v34  ;;  %v1073_v25 = vpack.c.bf16 %v1069_v21, %v1068_v20  ;;  %v2008_v39 = vld [vmem:[#allocation10 + $0x118] sm:$0xff]   ;;  %v2011_v34 = vld [vmem:[#allocation10 + $0x108] sm:$0xff]  }
 0x15d   :  { %1857 = vmatpush3.bf16.msra.mxu0 %v1989_v35  ;;  %680 = vst [vmem:[#allocation3 + $0x22] sm:$0xff] %v2337_v58  ;;  %1830 = vmatprep.subr.bf16.mxu1 %v2147_v1  ;;  %v943_v40 = vpack.c.bf16 %v2337_v58, %v2337_v58  ;;  %v2013_v35 = vld [vmem:[#allocation10 + $0x100] sm:$0xff]   ;;  %v1200_v45 = vld [vmem:[#allocation3 + $0x4] sm:$0xff] }
 0x15e   :  { %1858 = vmatprep.subr.bf16.mxu0 %v2147_v1  ;;  %1792 = vmatprep.mubr.msk.bf16.mxu1 %vm2148_vm0, %v2147_v1  ;;  %v1201_v46 = vld [vmem:[#allocation3 + $0xc] sm:$0xff] }
 0x15f   :  { %1820 = vmatprep.mubr.msk.bf16.mxu0 %vm2148_vm0, %v2147_v1  ;;  %v1205_v47 = vpack.c.bf16 %v1201_v46, %v1200_v45 }
 0x160   :  { %1831 = vmatpush3.bf16.msra.mxu1 %v1990_v59  ;;  %v708_v0 = vld [vmem:[#allocation3 + $0x19] sm:$0xff] }
 0x161   :  { %1859 = vmatpush3.bf16.msra.mxu0 %v1991_v60  ;;  %v684_v3 = vld [vmem:[#allocation3 + $0x18] sm:$0xff]  ;;  %1832 = vmatprep.subr.bf16.mxu1 %v2147_v1  ;;  %v711_v4 = vpack.c.bf16 %v708_v0, %v707_v61 }
 0x162   :  { %1860 = vmatprep.subr.bf16.mxu0 %v2147_v1  ;;  %v687_v5 = vpack.c.bf16 %v684_v3, %v683_v2  ;;  %v1070_v32 = vld [vmem:[#allocation3 + $0x13] sm:$0xff] }
 0x163   :  { %1793 = vmatmul.mubr.bf16.gmra.mxu1 %v711_v4  ;;  %v1202_v48 = vld [vmem:[#allocation3 + $0x14] sm:$0xff] }
 0x164   :  { %1821 = vmatmul.mubr.bf16.gmra.mxu0 %v687_v5  ;;  %1833 = vmatpush3.bf16.msra.mxu1 %v1992_v62  ;;  %v709_v8 = vld [vmem:[#allocation3 + $0x21] sm:$0xff] }
 0x165   :  { %1861 = vmatpush3.bf16.msra.mxu0 %v1993_v63  ;;  %1834 = vmatprep.subr.bf16.mxu1 %v2147_v1  ;;  %v685_v9 = vld [vmem:[#allocation3 + $0x20] sm:$0xff]  ;;  %v712_v12 = vpack.c.bf16 %v709_v8, %v709_v8 }
 0x166   :  { %1862 = vmatprep.subr.bf16.mxu0 %v2147_v1  ;;  %1796 = vmatprep.mubr.msk.bf16.mxu1 %vm2148_vm0, %v2147_v1  ;;  %v688_v13 = vpack.c.bf16 %v685_v9, %v685_v9  ;;  %v1071_v24 = vld [vmem:[#allocation3 + $0x1b] sm:$0xff]  ;;  %v1072_v38 = vld [vmem:[#allocation3 + $0x23] sm:$0xff] }
 0x167   :  { %1824 = vmatprep.mubr.msk.bf16.mxu0 %vm2148_vm0, %v2147_v1  ;;  %v1074_v30 = vpack.c.bf16 %v1071_v24, %v1070_v32  ;;  %v1075_v41 = vpack.c.bf16 %v1072_v38, %v1072_v38 }
 0x168   :  { %1835 = vmatpush3.bf16.msra.mxu1 %v1994_v6 }
 0x169   :  { %1863 = vmatpush3.bf16.msra.mxu0 %v1995_v7  ;;  %1836 = vmatprep.subr.bf16.mxu1 %v2147_v1 }
 0x16a   :  { %1864 = vmatprep.subr.bf16.mxu0 %v2147_v1 }
 0x16b   :  { %1797 = vmatmul.mubr.bf16.gmra.mxu1 %v712_v12 }
 0x16c   :  { %1825 = vmatmul.mubr.bf16.gmra.mxu0 %v688_v13  ;;  %1837 = vmatpush3.bf16.msra.mxu1 %v1996_v10 }
 0x16d   :  { %1865 = vmatpush3.bf16.msra.mxu0 %v1997_v11  ;;  %1838 = vmatprep.subr.bf16.mxu1 %v2147_v1 }
 0x16e   :  { %1866 = vmatprep.subr.bf16.mxu0 %v2147_v1  ;;  %1844 = vmatprep.mubr.msk.bf16.mxu1 %vm2148_vm0, %v2147_v1 }
 0x16f   :  { %1872 = vmatprep.mubr.msk.bf16.mxu0 %vm2148_vm0, %v2147_v1 }
 0x170   :  { %1839 = vmatpush3.bf16.msra.mxu1 %v1998_v14 }
 0x171   :  { %1867 = vmatpush3.bf16.msra.mxu0 %v1999_v15  ;;  %1840 = vmatprep.subr.bf16.mxu1 %v2147_v1 }
 0x172   :  { %1868 = vmatprep.subr.bf16.mxu0 %v2147_v1 }
 0x174   :  { %1841 = vmatpush3.bf16.msra.mxu1 %v2000_v16 }
 0x175   :  { %1869 = vmatpush3.bf16.msra.mxu0 %v2001_v17  ;;  %1842 = vmatprep.subr.bf16.mxu1 %v2147_v1 }
 0x176   :  { %1870 = vmatprep.subr.bf16.mxu0 %v2147_v1 }
 0x178   :  { %1843 = vmatpush3.bf16.msra.mxu1 %v2002_v18 }
 0x179   :  { %1871 = vmatpush3.bf16.msra.mxu0 %v2003_v19  ;;  %1884 = vmatprep.subr.bf16.mxu1 %v2147_v1 }
 0x17a   :  { %1912 = vmatprep.subr.bf16.mxu0 %v2147_v1 }
 0x17b   :  { %1845 = vmatmul.mubr.bf16.vlgmr.msra.gmra.mxu1 %v941_v23 }
 0x17c   :  { %1873 = vmatmul.mubr.bf16.vlgmr.msra.gmra.mxu0 %v1073_v25  ;;  %1885 = vmatpush3.bf16.msra.mxu1 %v2004_v22 }
 0x17d   :  { %1848 = vmatprep.mubr.msk.bf16.mxu1 %vm2148_vm0, %v2147_v1  ;;  %1886 = vmatprep.subr.bf16.mxu1 %v2147_v1 }
 0x17e   :  { %1876 = vmatprep.mubr.msk.bf16.mxu0 %vm2148_vm0, %v2147_v1  ;;  %1913 = vmatpush3.bf16.msra.mxu0 %v2010_v26 }
 0x17f   :  { %1914 = vmatprep.subr.bf16.mxu0 %v2147_v1 }
 0x180   :  { %1887 = vmatpush3.bf16.msra.mxu1 %v2005_v27 }
 0x181   :  { %1888 = vmatprep.subr.bf16.mxu1 %v2147_v1 }
 0x182   :  { %1915 = vmatpush3.bf16.msra.mxu0 %v2012_v29 }
 0x183   :  { %1849 = vmatmul.mubr.bf16.gmra.mxu1 %v942_v36  ;;  %1916 = vmatprep.subr.bf16.mxu0 %v2147_v1 }
 0x184   :  { %1877 = vmatmul.mubr.bf16.gmra.mxu0 %v1074_v30  ;;  %1889 = vmatpush3.bf16.msra.mxu1 %v2006_v33 }
 0x185   :  { %1852 = vmatprep.mubr.msk.bf16.mxu1 %vm2148_vm0, %v2147_v1  ;;  %1890 = vmatprep.subr.bf16.mxu1 %v2147_v1 }
 0x186   :  { %1880 = vmatprep.mubr.msk.bf16.mxu0 %vm2148_vm0, %v2147_v1  ;;  %1917 = vmatpush3.bf16.msra.mxu0 %v2014_v31 }
 0x187   :  { %1918 = vmatprep.subr.bf16.mxu0 %v2147_v1 }
 0x188   :  { %1891 = vmatpush3.bf16.msra.mxu1 %v2007_v37 }
 0x189   :  { %1892 = vmatprep.subr.bf16.mxu1 %v2147_v1 }
 0x18a   :  { %1919 = vmatpush3.bf16.msra.mxu0 %v2015_v43 }
 0x18b   :  { %1853 = vmatmul.mubr.bf16.gmra.mxu1 %v943_v40 }
 0x18c   :  { %1881 = vmatmul.mubr.bf16.gmra.mxu0 %v1075_v41  ;;  %1893 = vmatpush3.bf16.msra.mxu1 %v2008_v39 }
 0x18d   :  { %1900 = vmatprep.mubr.msk.bf16.mxu1 %vm2148_vm0, %v2147_v1  ;;  %1894 = vmatprep.subr.bf16.mxu1 %v2147_v1 }
 0x18e   :  { %1920 = vmatprep.mubr.msk.bf16.mxu0 %vm2148_vm0, %v2147_v1 }
 0x190   :  { %1895 = vmatpush3.bf16.msra.mxu1 %v2009_v44 }
 0x191   :  { %1896 = vmatprep.subr.bf16.mxu1 %v2147_v1 }
 0x194   :  { %1921 = vmatmul.mubr.msk.bf16.vlgmr.msra.gmra.mxu0 %vm102_vm3, %v2269_v42  ;;  %1897 = vmatpush3.bf16.msra.mxu1 %v2011_v34  ;;  %v1203_v42 = vld [vmem:[#allocation3 + $0x1c] sm:$0xff] }
 0x195   :  { %1924 = vmatprep.mubr.msk.bf16.mxu0 %vm2148_vm0, %v2147_v1  ;;  %1898 = vmatprep.subr.bf16.mxu1 %v2147_v1  ;;  %v1206_v49 = vpack.c.bf16 %v1203_v42, %v1202_v48 }
 0x198   :  { %1899 = vmatpush3.bf16.msra.mxu1 %v2013_v35 }
 0x199   :  { %1932 = vmatprep.subr.bf16.mxu1 %v2147_v1 }
 0x19b   :  { %1901 = vmatmul.mubr.bf16.vlgmr.msra.gmra.mxu1 %v1205_v47  ;;  %v1566_v47 = vld [vmem:[%s2432_s4] ss:$0 sm:$0xff]  ;;  %s2149_s4 = smov [#allocation14]  }
 0x19c   :  { %1925 = vmatmul.mubr.msk.bf16.gmra.mxu0 %vm102_vm3, %v2279_v50  ;;  %1936 = vmatpush3.bf16.msra.mxu1 %v2010_v26  ;;  %v1204_v50 = vld [vmem:[#allocation3 + $0x24] sm:$0xff]  ;;  %s1475_s30 = sshll.u32 %s2149_s4, 4  ;;  %s1476_s30 = int_to_ptr.vmem [resolvable:$true] %s1475_s30 }
 0x19d   :  { %1904 = vmatprep.mubr.msk.bf16.mxu1 %vm2148_vm0, %v2147_v1  ;;  %1933 = vmatprep.subr.bf16.mxu1 %v2147_v1  ;;  %v1207_v51 = vpack.c.bf16 %v1204_v50, %v1204_v50  ;;  %s2108_s8 = scalar_lea.vmem %s1476_s30, 512  ;;  %p2113_p12 = scmp.lt.s32.totalorder %s1476_s30, %s1476_s30 }
 0x19e   :  { %p2109_p11 = scmp.ne.s32.totalorder %s1476_s30, %s2108_s8  ;;  %p2114_p13 = scmp.lt.s32.totalorder %s2108_s8, %s2108_s8 }
 0x1a0   :  { %1937 = vmatpush3.bf16.msra.mxu1 %v2012_v29  ;;  %p2115_p0 = por %p2114_p13, %p2113_p12 }
 0x1a1   :  { %1934 = vmatprep.subr.bf16.mxu1 %v2147_v1 }
 0x1a2   :  { %p2116_p1 = pnand %p2115_p0, %p2109_p11 }
 0x1a3   :  { %1905 = vmatmul.mubr.bf16.gmra.mxu1 %v1206_v49 }
 0x1a4   :  { %1938 = vmatpush3.bf16.msra.mxu1 %v2014_v31  ;;  %1908 = vmatprep.mubr.msk.bf16.mxu1 %vm2148_vm0, %v2147_v1 }
 0x1a5   :  { %1935 = vmatprep.subr.bf16.mxu1 %v2147_v1 }
 0x1a8   :  { %1939 = vmatpush3.bf16.msra.mxu1 %v2015_v43 }
 0x1ab   :  { %1909 = vmatmul.mubr.bf16.gmra.mxu1 %v1207_v51 }
 0x1ac   :  { %1928 = vmatprep.mubr.msk.bf16.mxu1 %vm2148_vm0, %v2147_v1 }
 0x1b3   :  { %1929 = vmatmul.mubr.msk.bf16.vlgmr.msra.gmra.mxu1 %vm102_vm3, %v2290_v55 }
 0x21b   :  { %v812_v52 = vpop.f32.mrf.mxu1 }
 0x21c   :  { %v915_v53 = vpop.f32.mrf.mxu0 }
 0x21d   :  { %v1790_v54 = vpop.f32.mrf.mxu1  ;;  %v916_v39 = vadd.f32 %v915_v53, %v812_v52  ;;  %v1456_v53 = vstv %s1574_s3 }
 0x21e   :  { %v1818_v56 = vpop.f32.mrf.mxu0 }
 0x21f   :  { %v815_v57 = vpop.f32.mrf.mxu1 }
 0x220   :  { %v918_v58 = vpop.f32.mrf.mxu0 }
 0x221   :  { %v1791_v59 = vpop.f32.mrf.mxu1  ;;  %v919_v44 = vadd.f32 %v918_v58, %v815_v57 }
 0x222   :  { %v1819_v60 = vpop.f32.mrf.mxu0 }
 0x223   :  { %v820_v61 = vpop.f32.mrf.mxu1 }
 0x224   :  { %v923_v62 = vpop.f32.mrf.mxu0 }
 0x225   :  { %v1794_v63 = vpop.f32.mrf.mxu1 }
 0x226   :  { %v1822_v0 = vpop.f32.mrf.mxu0 }
 0x227   :  { %v822_v2 = vpop.f32.mrf.mxu1 }
 0x228   :  { %v925_v3 = vpop.f32.mrf.mxu0 }
 0x229   :  { %v1795_v4 = vpop.f32.mrf.mxu1  ;;  %v926_v59 = vadd.f32 %v925_v3, %v822_v2 }
 0x22a   :  { %v1823_v5 = vpop.f32.mrf.mxu0 }
 0x22b   :  { %v2413_v1 = vpop.f32.mrf.mxu1 }
 0x22c   :  { %v2415_v6 = vpop.f32.mrf.mxu0 }
 0x22d   :  { %v1798_v55 = vpop.f32.mrf.mxu1 }
 0x22e   :  { %v1826_v7 = vpop.f32.mrf.mxu0 }
 0x22f   :  { %v830_v8 = vpop.f32.mrf.mxu1 }
 0x230   :  { %v933_v9 = vpop.f32.mrf.mxu0  ;;  %v931_v8 = vadd.f32 %v2415_v6, %v2413_v1 }
 0x231   :  { %v1799_v10 = vpop.f32.mrf.mxu1 }
 0x232   :  { %v1827_v11 = vpop.f32.mrf.mxu0 }
 0x23b   :  { %v1043_v12 = vpop.f32.mrf.mxu1 }
 0x23c   :  { %v1175_v13 = vpop.f32.mrf.mxu0  ;;  %v1064_v41 = vadd.f32 %v1043_v12, %v916_v39 }
 0x23d   :  { %v1846_v14 = vpop.f32.mrf.mxu1 }
 0x23e   :  { %v1874_v15 = vpop.f32.mrf.mxu0  ;;  %v1196_v35 = vadd.f32 %v1175_v13, %v1064_v41 }
 0x23f   :  { %v1046_v16 = vpop.f32.mrf.mxu1 }
 0x240   :  { %v1178_v17 = vpop.f32.mrf.mxu0  ;;  %v1065_v45 = vadd.f32 %v1046_v16, %v919_v44 }
 0x241   :  { %v1847_v18 = vpop.f32.mrf.mxu1 }
 0x242   :  { %v1875_v19 = vpop.f32.mrf.mxu0  ;;  %v1197_v51 = vadd.f32 %v1178_v17, %v1065_v45 }
 0x243   :  { %v1051_v20 = vpop.f32.mrf.mxu1 }
 0x244   :  { %v1183_v21 = vpop.f32.mrf.mxu0 }
 0x245   :  { %v1850_v22 = vpop.f32.mrf.mxu1 }
 0x246   :  { %v1878_v23 = vpop.f32.mrf.mxu0 }
 0x247   :  { %v1053_v25 = vpop.f32.mrf.mxu1 }
 0x248   :  { %v1185_v26 = vpop.f32.mrf.mxu0  ;;  %v1066_v62 = vadd.f32 %v1053_v25, %v926_v59 }
 0x249   :  { %v1851_v27 = vpop.f32.mrf.mxu1 }
 0x24a   :  { %v1879_v28 = vpop.f32.mrf.mxu0  ;;  %v1198_v9 = vadd.f32 %v1185_v26, %v1066_v62 }
 0x24b   :  { %v1058_v24 = vpop.f32.mrf.mxu1 }
 0x24c   :  { %v1190_v29 = vpop.f32.mrf.mxu0  ;;  %v1067_v3 = vadd.f32 %v1058_v24, %v931_v8 }
 0x24d   :  { %v1854_v32 = vpop.f32.mrf.mxu1 }
 0x24e   :  { %v1882_v33 = vpop.f32.mrf.mxu0  ;;  %v1199_v16 = vadd.f32 %v1190_v29, %v1067_v3 }
 0x24f   :  { %v1061_v36 = vpop.f32.mrf.mxu1 }
 0x250   :  { %v1193_v30 = vpop.f32.mrf.mxu0 }
 0x251   :  { %v1855_v31 = vpop.f32.mrf.mxu1 }
 0x252   :  { %v1883_v37 = vpop.f32.mrf.mxu0 }
 0x254   :  { %v1426_v38 = vpop.f32.mrf.mxu0 }
 0x256   :  { %v1922_v40 = vpop.f32.mrf.mxu0 }
 0x258   :  { %v1429_v43 = vpop.f32.mrf.mxu0 }
 0x25a   :  { %v1923_v34 = vpop.f32.mrf.mxu0 }
 0x25b   :  { %v1307_v46 = vpop.f32.mrf.mxu1 }
 0x25c   :  { %v1434_v42 = vpop.f32.mrf.mxu0  ;;  %v1328_v48 = vadd.f32 %v1307_v46, %v1196_v35 }
 0x25d   :  { %v1902_v49 = vpop.f32.mrf.mxu1 }
 0x25e   :  { %v1926_v50 = vpop.f32.mrf.mxu0  ;;  %v1339_v54 = vadd.f32 %v1566_v47, %v1328_v48 }
 0x25f   :  { %v1310_v52 = vpop.f32.mrf.mxu1 }
 0x260   :  { %v1436_v56 = vpop.f32.mrf.mxu0  ;;  %v1329_v60 = vadd.f32 %v1310_v52, %v1197_v51  ;;  %v1447_v57 = vadd.f32 %v1426_v38, %v1339_v54 }
 0x261   :  { %v1903_v58 = vpop.f32.mrf.mxu1 }
 0x262   :  { %v1927_v61 = vpop.f32.mrf.mxu0  ;;  %vm1451_vm8 = vcmp.ge.f32.partialorder %v1447_v57, 0.0  ;;  %v1457_v63 = vmul.f32 %v1456_v53, %v1447_v57  ;;  %v1340_v0 = vadd.f32 %v1566_v47, %v1329_v60 }
 0x263   :  { %v1315_v4 = vpop.f32.mrf.mxu1 }
 0x264   :  { %v1461_v5 = vsel %vm1451_vm8, %v1447_v57, %v1457_v63  ;;  %v1448_v55 = vadd.f32 %v1429_v43, %v1340_v0 }
 0x265   :  { %1465 = vst [vmem:[#allocation14] sm:$0xff] %v1461_v5  ;;  %v1906_v7 = vpop.f32.mrf.mxu1 }
 0x266   :  { %vm1452_vm9 = vcmp.ge.f32.partialorder %v1448_v55, 0.0  ;;  %v1458_v10 = vmul.f32 %v1456_v53, %v1448_v55 }
 0x267   :  { %v1317_v2 = vpop.f32.mrf.mxu1 }
 0x268   :  { %v1462_v11 = vsel %vm1452_vm9, %v1448_v55, %v1458_v10  ;;  %v1330_v12 = vadd.f32 %v1317_v2, %v1198_v9 }
 0x269   :  { %1466 = vst [vmem:[#allocation14 + $0x8] sm:$0xff] %v1462_v11  ;;  %v1907_v13 = vpop.f32.mrf.mxu1 }
 0x26a   :  { %v1341_v14 = vadd.f32 %v1566_v47, %v1330_v12 }
 0x26b   :  { %v1322_v15 = vpop.f32.mrf.mxu1 }
 0x26c   :  { %v1449_v17 = vadd.f32 %v1436_v56, %v1341_v14  ;;  %v1331_v19 = vadd.f32 %v1322_v15, %v1199_v16 }
 0x26d   :  { %v1910_v18 = vpop.f32.mrf.mxu1 }
 0x26e   :  { %vm1453_vm10 = vcmp.ge.f32.partialorder %v1449_v17, 0.0  ;;  %v1459_v20 = vmul.f32 %v1456_v53, %v1449_v17  ;;  %v1342_v6 = vadd.f32 %v1566_v47, %v1331_v19 }
 0x26f   :  { %v1325_v21 = vpop.f32.mrf.mxu1 }
 0x270   :  { %v1463_v22 = vsel %vm1453_vm10, %v1449_v17, %v1459_v20 }
 0x271   :  { %1468 = vst [vmem:[#allocation14 + $0x10] sm:$0xff] %v1463_v22  ;;  %v1911_v1 = vpop.f32.mrf.mxu1 }
 0x273   :  { %v1441_v23 = vpop.f32.mrf.mxu1 }
 0x274   :  { %v1450_v25 = vadd.f32 %v1441_v23, %v1342_v6 }
 0x275   :  { %v1930_v26 = vpop.f32.mrf.mxu1 }
 0x276   :  { %vm1454_vm11 = vcmp.ge.f32.partialorder %v1450_v25, 0.0  ;;  %v1460_v27 = vmul.f32 %v1456_v53, %v1450_v25 }
 0x277   :  { %v1444_v28 = vpop.f32.mrf.mxu1 }
 0x278   :  { %v1464_v24 = vsel %vm1454_vm11, %v1450_v25, %v1460_v27 }
 0x279   :  { %1469 = vst [vmem:[#allocation14 + $0x18] sm:$0xff] %v1464_v24  ;;  %v1931_v29 = vpop.f32.mrf.mxu1 }
 0x27a   :  { %2119 = shalt.err (!%p2116_p1)
}
 0x27b   :  { %1481 = dma.vmem_to_hbm [thread:$0]  %s1476_s30, 512, %s2435_s7, [#allocation6], %s2142_s11, %s2142_s11, %s2143_s12  }
 0x27c   :  { %2136 = dma.done.wait [#allocation6], 512  }
 0x27d   :  { %2137 = vsyncadd [#allocation6], 4294966784 }
 0x27e   :  { %1485 = vsyncpa [#allocation5], 1 }
 0x27f   :  { %1486 = vsyncpa [#allocation9], 1 }
 0x280   :  { %1487 = vsyncpa [#allocation12], 1 }
 0x281   :  { %1488 = vsyncpa [#allocation6], 1 }
 0x282   :  { %1489 = vsyncpa [#allocation7], 1 }

</bundles_post_ra>
